<compile_context>
chip_gen: v7x
topology: tpu7x:2x2x1
jax: 0.10.0
libtpu: 0.0.40
codegen_flags: <defaults>
</compile_context>

<pallas_src>
import jax
import jax.numpy as jnp
from jax.experimental import pallas as pl
from jax.experimental.pallas import tpu as pltpu

D_MODEL = 64
NHEAD = 4
HEAD_DIM = D_MODEL // NHEAD
DIM_FF = 2048          # nn.TransformerEncoderLayer default
NUM_LAYERS = 2
LN_EPS = 1e-5


# ---------------------------------------------------------------------------
# Shared math helpers (traced inside the kernel and in the reference)
# ---------------------------------------------------------------------------
def _layer_norm(x, w, b, eps=LN_EPS):
    mean = jnp.mean(x, axis=-1, keepdims=True)
    var = jnp.mean((x - mean) ** 2, axis=-1, keepdims=True)
    return (x - mean) * jax.lax.rsqrt(var + eps) * w + b


# ---------------------------------------------------------------------------
# Fused forward kernel: grid axis = transformer layer (sequential / "arbitrary")
# ---------------------------------------------------------------------------
def _fused_forward_kernel(
        x_ref, emb_w_ref, emb_b_ref,
        wq_ref, wk_ref, wv_ref, bq_ref, bk_ref, bv_ref,
        wo_ref, bo_ref,
        ln1w_ref, ln1b_ref, ln2w_ref, ln2b_ref,
        w1_ref, b1_ref, w2_ref, b2_ref,
        cls1w_ref, cls1b_ref, cls2w_ref, cls2b_ref,
        out_ref,
        h_ref):
    layer = pl.program_id(0)
    S = h_ref.shape[0]

    # ---- embedding (only on the first grid step): h = relu(x @ W_emb + b) ----
    # TODO(synk): Dropout(0.1) after the embedding/attention/FFN is eval-mode identity.
    @pl.when(layer == 0)
    def _():
        h0 = jnp.dot(x_ref[...], emb_w_ref[...],
                     preferred_element_type=jnp.float32) + emb_b_ref[...]
        h_ref[...] = jnp.maximum(h0, 0.0)

    x = h_ref[...]                                    # (S, D) f32, VMEM-resident
    x16 = x.astype(jnp.bfloat16)
    xb = jnp.broadcast_to(x16, (NHEAD, S, D_MODEL))   # (H, S, D) for batched head matmuls

    # ---- multi-head self-attention (batched over heads, no lane slices/concat) ----
    q = jnp.einsum("hsd,hdk->hsk", xb, wq_ref[...],
                   preferred_element_type=jnp.float32) + bq_ref[...]       # (H, S, hd)
    k = jnp.einsum("hsd,hdk->hsk", xb, wk_ref[...],
                   preferred_element_type=jnp.float32) + bk_ref[...]
    v = jnp.einsum("hsd,hdk->hsk", xb, wv_ref[...],
                   preferred_element_type=jnp.float32) + bv_ref[...]

    s = jnp.einsum("hqd,hkd->hqk", q, k,
                   preferred_element_type=jnp.float32) * (1.0 / (HEAD_DIM ** 0.5))
    s = s - jnp.max(s, axis=-1, keepdims=True)
    p = jnp.exp(s)
    p = p / jnp.sum(p, axis=-1, keepdims=True)
    o = jnp.einsum("hqk,hkd->hqd", p, v,
                   preferred_element_type=jnp.float32)                     # (H, S, hd)

    attn = jnp.einsum("hsk,hkd->hsd", o.astype(jnp.bfloat16), wo_ref[...],
                      preferred_element_type=jnp.float32)                  # (H, S, D)
    attn = jnp.sum(attn, axis=0) + bo_ref[...]                             # (S, D)

    x1 = _layer_norm(x + attn, ln1w_ref[...], ln1b_ref[...])

    # ---- feed-forward (bf16 weights, f32 accumulation) ----
    h1 = jnp.dot(x1.astype(jnp.bfloat16), w1_ref[...],
                 preferred_element_type=jnp.float32) + b1_ref[...]
    h1 = jnp.maximum(h1, 0.0)
    h2 = jnp.dot(h1.astype(jnp.bfloat16), w2_ref[...],
                 preferred_element_type=jnp.float32) + b2_ref[...]

    h_ref[...] = _layer_norm(x1 + h2, ln2w_ref[...], ln2b_ref[...])

    # ---- classifier head (only on the last grid step) ----
    @pl.when(layer == NUM_LAYERS - 1)
    def _():
        hc = jnp.dot(h_ref[...], cls1w_ref[...],
                     preferred_element_type=jnp.float32) + cls1b_ref[...]
        hc = jnp.maximum(hc, 0.0)
        out = jnp.dot(hc, cls2w_ref[...],
                      preferred_element_type=jnp.float32) + cls2b_ref[...]
        out_ref[...] = out.astype(out_ref.dtype)


def transformer_classifier(x, pp):
    """x: (S, input_dim) f32; pp: prepared params (see prepare_params)."""
    S = x.shape[0]
    C = pp["cls2_w"].shape[1]

    const2 = lambda l: (0, 0)
    lyr3 = lambda l: (l, 0, 0)
    lyr4 = lambda l: (l, 0, 0, 0)

    in_specs = [
        pl.BlockSpec(x.shape, const2),                           # x
        pl.BlockSpec(pp["emb_w"].shape, const2),                 # emb_w
        pl.BlockSpec(pp["emb_b"].shape, const2),                 # emb_b
        pl.BlockSpec((None, NHEAD, D_MODEL, HEAD_DIM), lyr4),    # wq
        pl.BlockSpec((None, NHEAD, D_MODEL, HEAD_DIM), lyr4),    # wk
        pl.BlockSpec((None, NHEAD, D_MODEL, HEAD_DIM), lyr4),    # wv
        pl.BlockSpec((None, NHEAD, 1, HEAD_DIM), lyr4),          # bq
        pl.BlockSpec((None, NHEAD, 1, HEAD_DIM), lyr4),          # bk
        pl.BlockSpec((None, NHEAD, 1, HEAD_DIM), lyr4),          # bv
        pl.BlockSpec((None, NHEAD, HEAD_DIM, D_MODEL), lyr4),    # wo
        pl.BlockSpec((None, 1, D_MODEL), lyr3),                  # bo
        pl.BlockSpec((None, 1, D_MODEL), lyr3),                  # ln1_w
        pl.BlockSpec((None, 1, D_MODEL), lyr3),                  # ln1_b
        pl.BlockSpec((None, 1, D_MODEL), lyr3),                  # ln2_w
        pl.BlockSpec((None, 1, D_MODEL), lyr3),                  # ln2_b
        pl.BlockSpec((None, D_MODEL, DIM_FF), lyr3),             # w1
        pl.BlockSpec((None, 1, DIM_FF), lyr3),                   # b1
        pl.BlockSpec((None, DIM_FF, D_MODEL), lyr3),             # w2
        pl.BlockSpec((None, 1, D_MODEL), lyr3),                  # b2
        pl.BlockSpec(pp["cls1_w"].shape, const2),                # cls1_w
        pl.BlockSpec(pp["cls1_b"].shape, const2),                # cls1_b
        pl.BlockSpec(pp["cls2_w"].shape, const2),                # cls2_w
        pl.BlockSpec(pp["cls2_b"].shape, const2),                # cls2_b
    ]

    return pl.pallas_call(
        _fused_forward_kernel,
        out_shape=jax.ShapeDtypeStruct((S, C), jnp.float32),
        grid_spec=pltpu.PrefetchScalarGridSpec(
            num_scalar_prefetch=0,
            grid=(NUM_LAYERS,),
            in_specs=in_specs,
            out_specs=pl.BlockSpec((S, C), const2),
            scratch_shapes=[pltpu.VMEM((S, D_MODEL), jnp.float32)],
        ),
        compiler_params=pltpu.CompilerParams(
            dimension_semantics=("arbitrary",),          # layer axis carries state
            vmem_limit_bytes=16 * 1024 * 1024,           # footprint <3 MiB; safe on v7x's 64 MiB
        ),
    )(x, pp["emb_w"], pp["emb_b"],
      pp["wq"], pp["wk"], pp["wv"], pp["bq"], pp["bk"], pp["bv"],
      pp["wo"], pp["bo"],
      pp["ln1_w"], pp["ln1_b"], pp["ln2_w"], pp["ln2_b"],
      pp["w1"], pp["b1"], pp["w2"], pp["b2"],
      pp["cls1_w"], pp["cls1_b"], pp["cls2_w"], pp["cls2_b"])


# ---------------------------------------------------------------------------
# Parameter init (PyTorch layout) + one-time prep (transpose / head-split / bf16 / stack)
# ---------------------------------------------------------------------------
def init_params(key, input_dim, num_classes):
    keys = list(jax.random.split(key, 24))
    kit = iter(keys)

    def lin_init(dout, din):
        bound = din ** -0.5
        w = jax.random.uniform(next(kit), (dout, din), jnp.float32, -bound, bound)
        b = jax.random.uniform(next(kit), (dout,), jnp.float32, -bound, bound)
        return w, b

    params = {}
    params["emb_w"], params["emb_b"] = lin_init(D_MODEL, input_dim)
    layers = []
    for _ in range(NUM_LAYERS):
        in_w, in_b = lin_init(3 * D_MODEL, D_MODEL)
        out_w, out_b = lin_init(D_MODEL, D_MODEL)
        l1_w, l1_b = lin_init(DIM_FF, D_MODEL)
        l2_w, l2_b = lin_init(D_MODEL, DIM_FF)
        layers.append(dict(
            in_proj_w=in_w, in_proj_b=in_b,
            out_proj_w=out_w, out_proj_b=out_b,
            ln1_w=jnp.ones((D_MODEL,), jnp.float32),
            ln1_b=jnp.zeros((D_MODEL,), jnp.float32),
            ln2_w=jnp.ones((D_MODEL,), jnp.float32),
            ln2_b=jnp.zeros((D_MODEL,), jnp.float32),
            lin1_w=l1_w, lin1_b=l1_b,
            lin2_w=l2_w, lin2_b=l2_b,
        ))
    params["layers"] = layers
    params["cls1_w"], params["cls1_b"] = lin_init(32, D_MODEL)
    params["cls2_w"], params["cls2_b"] = lin_init(num_classes, 32)
    return params


def prepare_params(p):
    """One-time prep: (Din, Dout) layout, head-split attention weights, bf16 big weights,
    per-layer weights stacked on a leading NUM_LAYERS axis (for grid pipelining)."""

    def heads_w(w_torch):           # (D, D) torch (Dout, Din) -> (H, Din=D, hd) bf16
        return jnp.transpose(w_torch.T.reshape(D_MODEL, NHEAD, HEAD_DIM),
                             (1, 0, 2)).astype(jnp.bfloat16)

    def heads_b(b):                 # (D,) -> (H, 1, hd) f32
        return b.reshape(NHEAD, 1, HEAD_DIM).astype(jnp.float32)

    per = {k: [] for k in ("wq", "wk", "wv", "bq", "bk", "bv", "wo", "bo",
                           "ln1_w", "ln1_b", "ln2_w", "ln2_b", "w1", "b1", "w2", "b2")}
    for lp in p["layers"]:
        wq, wk, wv = jnp.split(lp["in_proj_w"], 3, axis=0)     # each (D, D) torch layout
        bq, bk, bv = jnp.split(lp["in_proj_b"], 3, axis=0)
        per["wq"].append(heads_w(wq)); per["wk"].append(heads_w(wk)); per["wv"].append(heads_w(wv))
        per["bq"].append(heads_b(bq)); per["bk"].append(heads_b(bk)); per["bv"].append(heads_b(bv))
        per["wo"].append(lp["out_proj_w"].T.reshape(NHEAD, HEAD_DIM, D_MODEL).astype(jnp.bfloat16))
        per["bo"].append(lp["out_proj_b"].reshape(1, D_MODEL))
        per["ln1_w"].append(lp["ln1_w"].reshape(1, -1)); per["ln1_b"].append(lp["ln1_b"].reshape(1, -1))
        per["ln2_w"].append(lp["ln2_w"].reshape(1, -1)); per["ln2_b"].append(lp["ln2_b"].reshape(1, -1))
        per["w1"].append(lp["lin1_w"].T.astype(jnp.bfloat16)); per["b1"].append(lp["lin1_b"].reshape(1, -1))
        per["w2"].append(lp["lin2_w"].T.astype(jnp.bfloat16)); per["b2"].append(lp["lin2_b"].reshape(1, -1))

    pp = {k: jnp.stack(v, axis=0) for k, v in per.items()}
    pp["emb_w"] = p["emb_w"].T                       # (input_dim, D) f32
    pp["emb_b"] = p["emb_b"].reshape(1, -1)
    pp["cls1_w"] = p["cls1_w"].T                     # (D, 32) f32
    pp["cls1_b"] = p["cls1_b"].reshape(1, -1)
    pp["cls2_w"] = p["cls2_w"].T                     # (32, C) f32
    pp["cls2_b"] = p["cls2_b"].reshape(1, -1)
    return pp


# ---------------------------------------------------------------------------
# Pure-JAX reference mirroring the kernel's math (same dtypes / layouts)
# ---------------------------------------------------------------------------
def reference_forward(x, pp):
    h = jnp.maximum(x @ pp["emb_w"] + pp["emb_b"], 0.0)
    for l in range(NUM_LAYERS):
        S = h.shape[0]
        xb = jnp.broadcast_to(h.astype(jnp.bfloat16), (NHEAD, S, D_MODEL))
        q = jnp.einsum("hsd,hdk->hsk", xb, pp["wq"][l],
                       preferred_element_type=jnp.float32) + pp["bq"][l]
        k = jnp.einsum("hsd,hdk->hsk", xb, pp["wk"][l],
                       preferred_element_type=jnp.float32) + pp["bk"][l]
        v = jnp.einsum("hsd,hdk->hsk", xb, pp["wv"][l],
                       preferred_element_type=jnp.float32) + pp["bv"][l]
        s = jnp.einsum("hqd,hkd->hqk", q, k,
                       preferred_element_type=jnp.float32) * (1.0 / (HEAD_DIM ** 0.5))
        pattn = jax.nn.softmax(s, axis=-1)
        o = jnp.einsum("hqk,hkd->hqd", pattn, v, preferred_element_type=jnp.float32)
        attn = jnp.einsum("hsk,hkd->hsd", o.astype(jnp.bfloat16), pp["wo"][l],
                          preferred_element_type=jnp.float32)
        attn = jnp.sum(attn, axis=0) + pp["bo"][l]
        x1 = _layer_norm(h + attn, pp["ln1_w"][l], pp["ln1_b"][l])
        h1 = jnp.maximum(jnp.dot(x1.astype(jnp.bfloat16), pp["w1"][l],
                                 preferred_element_type=jnp.float32) + pp["b1"][l], 0.0)
        h2 = jnp.dot(h1.astype(jnp.bfloat16), pp["w2"][l],
                     preferred_element_type=jnp.float32) + pp["b2"][l]
        h = _layer_norm(x1 + h2, pp["ln2_w"][l], pp["ln2_b"][l])
    h = jnp.maximum(h @ pp["cls1_w"] + pp["cls1_b"], 0.0)
    return h @ pp["cls2_w"] + pp["cls2_b"]


if __name__ == "__main__":
    INPUT_DIM, NUM_CLASSES, BATCH = 16, 4, 8

    key = jax.random.PRNGKey(0)
    kx, kp = jax.random.split(key)
    x = jax.random.normal(kx, (BATCH, INPUT_DIM), jnp.float32)
    params = prepare_params(init_params(kp, INPUT_DIM, NUM_CLASSES))

    out = transformer_classifier(x, params)
    out = jax.block_until_ready(out)

    ref = reference_forward(x, params)
    assert out.shape == (BATCH, NUM_CLASSES), out.shape
    assert jnp.allclose(out, ref, rtol=2e-3, atol=2e-3), (
        f"max abs diff {jnp.max(jnp.abs(out - ref))}")

    print("KERNEL_OK")
</pallas_src>

<mosaic_0001>
module attributes {stable_mosaic.version = 11 : i64} {
  func.func @_fused_forward_kernel(%arg0: i32, %arg1: memref<8x16xf32, #tpu.memory_space<vmem>>, %arg2: memref<16x64xf32, #tpu.memory_space<vmem>>, %arg3: memref<1x64xf32, #tpu.memory_space<vmem>>, %arg4: memref<1x4x64x16xbf16, #tpu.memory_space<vmem>>, %arg5: memref<1x4x64x16xbf16, #tpu.memory_space<vmem>>, %arg6: memref<1x4x64x16xbf16, #tpu.memory_space<vmem>>, %arg7: memref<1x4x1x16xf32, #tpu.memory_space<vmem>>, %arg8: memref<1x4x1x16xf32, #tpu.memory_space<vmem>>, %arg9: memref<1x4x1x16xf32, #tpu.memory_space<vmem>>, %arg10: memref<1x4x16x64xbf16, #tpu.memory_space<vmem>>, %arg11: memref<1x1x64xf32, #tpu.memory_space<vmem>>, %arg12: memref<1x1x64xf32, #tpu.memory_space<vmem>>, %arg13: memref<1x1x64xf32, #tpu.memory_space<vmem>>, %arg14: memref<1x1x64xf32, #tpu.memory_space<vmem>>, %arg15: memref<1x1x64xf32, #tpu.memory_space<vmem>>, %arg16: memref<1x64x2048xbf16, #tpu.memory_space<vmem>>, %arg17: memref<1x1x2048xf32, #tpu.memory_space<vmem>>, %arg18: memref<1x2048x64xbf16, #tpu.memory_space<vmem>>, %arg19: memref<1x1x64xf32, #tpu.memory_space<vmem>>, %arg20: memref<64x32xf32, #tpu.memory_space<vmem>>, %arg21: memref<1x32xf32, #tpu.memory_space<vmem>>, %arg22: memref<32x4xf32, #tpu.memory_space<vmem>>, %arg23: memref<1x4xf32, #tpu.memory_space<vmem>>, %arg24: memref<8x4xf32, #tpu.memory_space<vmem>>, %arg25: memref<8x64xf32, #tpu.memory_space<vmem>>) attributes {dimension_semantics = [#tpu.dimension_semantics<arbitrary>], iteration_bounds = array<i64: 2>, scalar_prefetch = 0 : i64, scratch_operands = 1 : i64, tpu.core_type = #tpu.core_type<tc>, window_params = [{pipeline_mode = #tpu.pipeline_mode<synchronous>, transform_indices = @transform_0, window_bounds = array<i64: 8, 16>}, {pipeline_mode = #tpu.pipeline_mode<synchronous>, transform_indices = @transform_1, window_bounds = array<i64: 16, 64>}, {pipeline_mode = #tpu.pipeline_mode<synchronous>, transform_indices = @transform_2, window_bounds = array<i64: 1, 64>}, {transform_indices = @transform_3, window_bounds = array<i64: 1, 4, 64, 16>}, {transform_indices = @transform_4, window_bounds = array<i64: 1, 4, 64, 16>}, {transform_indices = @transform_5, window_bounds = array<i64: 1, 4, 64, 16>}, {transform_indices = @transform_6, window_bounds = array<i64: 1, 4, 1, 16>}, {transform_indices = @transform_7, window_bounds = array<i64: 1, 4, 1, 16>}, {transform_indices = @transform_8, window_bounds = array<i64: 1, 4, 1, 16>}, {transform_indices = @transform_9, window_bounds = array<i64: 1, 4, 16, 64>}, {transform_indices = @transform_10, window_bounds = array<i64: 1, 1, 64>}, {transform_indices = @transform_11, window_bounds = array<i64: 1, 1, 64>}, {transform_indices = @transform_12, window_bounds = array<i64: 1, 1, 64>}, {transform_indices = @transform_13, window_bounds = array<i64: 1, 1, 64>}, {transform_indices = @transform_14, window_bounds = array<i64: 1, 1, 64>}, {transform_indices = @transform_15, window_bounds = array<i64: 1, 64, 2048>}, {transform_indices = @transform_16, window_bounds = array<i64: 1, 1, 2048>}, {transform_indices = @transform_17, window_bounds = array<i64: 1, 2048, 64>}, {transform_indices = @transform_18, window_bounds = array<i64: 1, 1, 64>}, {pipeline_mode = #tpu.pipeline_mode<synchronous>, transform_indices = @transform_19, window_bounds = array<i64: 64, 32>}, {pipeline_mode = #tpu.pipeline_mode<synchronous>, transform_indices = @transform_20, window_bounds = array<i64: 1, 32>}, {pipeline_mode = #tpu.pipeline_mode<synchronous>, transform_indices = @transform_21, window_bounds = array<i64: 32, 4>}, {pipeline_mode = #tpu.pipeline_mode<synchronous>, transform_indices = @transform_22, window_bounds = array<i64: 1, 4>}, {pipeline_mode = #tpu.pipeline_mode<synchronous>, transform_indices = @transform_23, window_bounds = array<i64: 8, 4>}]} {
    %c0_i32 = arith.constant 0 : i32
    %0 = arith.cmpi eq, %arg0, %c0_i32 : i32
    %1 = arith.extui %0 : i1 to i32
    %c0_i32_0 = arith.constant 0 : i32
    %2 = arith.cmpi ne, %1, %c0_i32_0 : i32
    scf.if %2 {
      %c0_82 = arith.constant 0 : index
      %c0_83 = arith.constant 0 : index
      %126 = vector.load %arg1[%c0_82, %c0_83] : memref<8x16xf32, #tpu.memory_space<vmem>>, vector<8x16xf32>
      %c0_84 = arith.constant 0 : index
      %c0_85 = arith.constant 0 : index
      %127 = vector.load %arg2[%c0_84, %c0_85] : memref<16x64xf32, #tpu.memory_space<vmem>>, vector<16x64xf32>
      %cst_86 = arith.constant dense<0.000000e+00> : vector<8x64xf32>
      %128 = tpu.matmul %126, %127, %cst_86 {dimension_numbers = #tpu.dot_dimension_numbers<[1], [0], [0], [1], [0, 0, 1, 1], [], []>} : vector<8x16xf32>, vector<16x64xf32>, vector<8x64xf32> -> vector<8x64xf32>
      %c0_87 = arith.constant 0 : index
      %c0_88 = arith.constant 0 : index
      %129 = vector.load %arg3[%c0_87, %c0_88] : memref<1x64xf32, #tpu.memory_space<vmem>>, vector<1x64xf32>
      %130 = vector.broadcast %129 : vector<1x64xf32> to vector<8x64xf32>
      %131 = arith.addf %128, %130 : vector<8x64xf32>
      %cst_89 = arith.constant 0.000000e+00 : f32
      %132 = vector.broadcast %cst_89 : f32 to vector<8x64xf32>
      %133 = arith.maximumf %131, %132 : vector<8x64xf32>
      %c0_90 = arith.constant 0 : index
      %c0_91 = arith.constant 0 : index
      %134 = vector.load %arg25[%c0_90, %c0_91] : memref<8x64xf32, #tpu.memory_space<vmem>>, vector<8x64xf32>
      tpu.vector_store %arg25[%c0_90, %c0_91], %133 {strides = array<i32>} : memref<8x64xf32, #tpu.memory_space<vmem>>, vector<8x64xf32>,
    } else {
    }
    %c0 = arith.constant 0 : index
    %c0_1 = arith.constant 0 : index
    %3 = vector.load %arg25[%c0, %c0_1] : memref<8x64xf32, #tpu.memory_space<vmem>>, vector<8x64xf32>
    %4 = arith.truncf %3 : vector<8x64xf32> to vector<8x64xbf16>
    %5 = vector.shape_cast %4 : vector<8x64xbf16> to vector<1x8x64xbf16>
    %6 = vector.broadcast %5 : vector<1x8x64xbf16> to vector<4x8x64xbf16>
    %c0_2 = arith.constant 0 : index
    %c0_3 = arith.constant 0 : index
    %c0_4 = arith.constant 0 : index
    %c0_5 = arith.constant 0 : index
    %7 = vector.load %arg4[%c0_2, %c0_3, %c0_4, %c0_5] : memref<1x4x64x16xbf16, #tpu.memory_space<vmem>>, vector<1x4x64x16xbf16>
    %8 = vector.shape_cast %7 : vector<1x4x64x16xbf16> to vector<4x64x16xbf16>
    "tpu.trace_start"() <{level = 10 : i32, message = "hsd,hdk->hsk"}> : () -> ()
    %cst = arith.constant dense<0.000000e+00> : vector<4x8x16xf32>
    %9 = tpu.matmul %6, %8, %cst {dimension_numbers = #tpu.dot_dimension_numbers<[2], [1], [1], [2], [0, 0, 0, 1, 1, 2], [0], [0]>} : vector<4x8x64xbf16>, vector<4x64x16xbf16>, vector<4x8x16xf32> -> vector<4x8x16xf32>
    "tpu.trace_stop"() : () -> ()
    %c0_6 = arith.constant 0 : index
    %c0_7 = arith.constant 0 : index
    %c0_8 = arith.constant 0 : index
    %c0_9 = arith.constant 0 : index
    %10 = vector.load %arg7[%c0_6, %c0_7, %c0_8, %c0_9] : memref<1x4x1x16xf32, #tpu.memory_space<vmem>>, vector<1x4x1x16xf32>
    %11 = vector.shape_cast %10 : vector<1x4x1x16xf32> to vector<4x1x16xf32>
    %12 = vector.broadcast %11 : vector<4x1x16xf32> to vector<4x8x16xf32>
    %13 = arith.addf %9, %12 : vector<4x8x16xf32>
    %c0_10 = arith.constant 0 : index
    %c0_11 = arith.constant 0 : index
    %c0_12 = arith.constant 0 : index
    %c0_13 = arith.constant 0 : index
    %14 = vector.load %arg5[%c0_10, %c0_11, %c0_12, %c0_13] : memref<1x4x64x16xbf16, #tpu.memory_space<vmem>>, vector<1x4x64x16xbf16>
    %15 = vector.shape_cast %14 : vector<1x4x64x16xbf16> to vector<4x64x16xbf16>
    "tpu.trace_start"() <{level = 10 : i32, message = "hsd,hdk->hsk"}> : () -> ()
    %cst_14 = arith.constant dense<0.000000e+00> : vector<4x8x16xf32>
    %16 = tpu.matmul %6, %15, %cst_14 {dimension_numbers = #tpu.dot_dimension_numbers<[2], [1], [1], [2], [0, 0, 0, 1, 1, 2], [0], [0]>} : vector<4x8x64xbf16>, vector<4x64x16xbf16>, vector<4x8x16xf32> -> vector<4x8x16xf32>
    "tpu.trace_stop"() : () -> ()
    %c0_15 = arith.constant 0 : index
    %c0_16 = arith.constant 0 : index
    %c0_17 = arith.constant 0 : index
    %c0_18 = arith.constant 0 : index
    %17 = vector.load %arg8[%c0_15, %c0_16, %c0_17, %c0_18] : memref<1x4x1x16xf32, #tpu.memory_space<vmem>>, vector<1x4x1x16xf32>
    %18 = vector.shape_cast %17 : vector<1x4x1x16xf32> to vector<4x1x16xf32>
    %19 = vector.broadcast %18 : vector<4x1x16xf32> to vector<4x8x16xf32>
    %20 = arith.addf %16, %19 : vector<4x8x16xf32>
    %c0_19 = arith.constant 0 : index
    %c0_20 = arith.constant 0 : index
    %c0_21 = arith.constant 0 : index
    %c0_22 = arith.constant 0 : index
    %21 = vector.load %arg6[%c0_19, %c0_20, %c0_21, %c0_22] : memref<1x4x64x16xbf16, #tpu.memory_space<vmem>>, vector<1x4x64x16xbf16>
    %22 = vector.shape_cast %21 : vector<1x4x64x16xbf16> to vector<4x64x16xbf16>
    "tpu.trace_start"() <{level = 10 : i32, message = "hsd,hdk->hsk"}> : () -> ()
    %cst_23 = arith.constant dense<0.000000e+00> : vector<4x8x16xf32>
    %23 = tpu.matmul %6, %22, %cst_23 {dimension_numbers = #tpu.dot_dimension_numbers<[2], [1], [1], [2], [0, 0, 0, 1, 1, 2], [0], [0]>} : vector<4x8x64xbf16>, vector<4x64x16xbf16>, vector<4x8x16xf32> -> vector<4x8x16xf32>
    "tpu.trace_stop"() : () -> ()
    %c0_24 = arith.constant 0 : index
    %c0_25 = arith.constant 0 : index
    %c0_26 = arith.constant 0 : index
    %c0_27 = arith.constant 0 : index
    %24 = vector.load %arg9[%c0_24, %c0_25, %c0_26, %c0_27] : memref<1x4x1x16xf32, #tpu.memory_space<vmem>>, vector<1x4x1x16xf32>
    %25 = vector.shape_cast %24 : vector<1x4x1x16xf32> to vector<4x1x16xf32>
    %26 = vector.broadcast %25 : vector<4x1x16xf32> to vector<4x8x16xf32>
    %27 = arith.addf %23, %26 : vector<4x8x16xf32>
    "tpu.trace_start"() <{level = 10 : i32, message = "hqd,hkd->hqk"}> : () -> ()
    %cst_28 = arith.constant dense<0.000000e+00> : vector<4x8x8xf32>
    %28 = tpu.matmul %13, %20, %cst_28 {dimension_numbers = #tpu.dot_dimension_numbers<[2], [2], [1], [1], [0, 0, 0, 1, 1, 1], [0], [0]>} : vector<4x8x16xf32>, vector<4x8x16xf32>, vector<4x8x8xf32> -> vector<4x8x8xf32>
    "tpu.trace_stop"() : () -> ()
    %cst_29 = arith.constant 2.500000e-01 : f32
    %29 = vector.broadcast %cst_29 : f32 to vector<4x8x8xf32>
    %30 = arith.mulf %28, %29 : vector<4x8x8xf32>
    %cst_30 = arith.constant dense<0xFF800000> : vector<4x8xf32>
    %31 = vector.multi_reduction <maximumf>, %30, %cst_30 [2] : vector<4x8x8xf32> to vector<4x8xf32>
    %32 = vector.shape_cast %31 : vector<4x8xf32> to vector<4x8x1xf32>
    %33 = vector.broadcast %32 : vector<4x8x1xf32> to vector<4x8x8xf32>
    %34 = arith.subf %30, %33 : vector<4x8x8xf32>
    %35 = math.exp %34 : vector<4x8x8xf32>
    %cst_31 = arith.constant dense<0.000000e+00> : vector<4x8xf32>
    %36 = vector.multi_reduction <add>, %35, %cst_31 [2] : vector<4x8x8xf32> to vector<4x8xf32>
    %37 = vector.shape_cast %36 : vector<4x8xf32> to vector<4x8x1xf32>
    %38 = vector.broadcast %37 : vector<4x8x1xf32> to vector<4x8x8xf32>
    %39 = arith.divf %35, %38 : vector<4x8x8xf32>
    "tpu.trace_start"() <{level = 10 : i32, message = "hqk,hkd->hqd"}> : () -> ()
    %cst_32 = arith.constant dense<0.000000e+00> : vector<4x8x16xf32>
    %40 = tpu.matmul %39, %27, %cst_32 {dimension_numbers = #tpu.dot_dimension_numbers<[2], [1], [1], [2], [0, 0, 0, 1, 1, 2], [0], [0]>} : vector<4x8x8xf32>, vector<4x8x16xf32>, vector<4x8x16xf32> -> vector<4x8x16xf32>
    "tpu.trace_stop"() : () -> ()
    %41 = arith.truncf %40 : vector<4x8x16xf32> to vector<4x8x16xbf16>
    %c0_33 = arith.constant 0 : index
    %c0_34 = arith.constant 0 : index
    %c0_35 = arith.constant 0 : index
    %c0_36 = arith.constant 0 : index
    %42 = vector.load %arg10[%c0_33, %c0_34, %c0_35, %c0_36] : memref<1x4x16x64xbf16, #tpu.memory_space<vmem>>, vector<1x4x16x64xbf16>
    %43 = vector.shape_cast %42 : vector<1x4x16x64xbf16> to vector<4x16x64xbf16>
    "tpu.trace_start"() <{level = 10 : i32, message = "hsk,hkd->hsd"}> : () -> ()
    %cst_37 = arith.constant dense<0.000000e+00> : vector<4x8x64xf32>
    %44 = tpu.matmul %41, %43, %cst_37 {dimension_numbers = #tpu.dot_dimension_numbers<[2], [1], [1], [2], [0, 0, 0, 1, 1, 2], [0], [0]>} : vector<4x8x16xbf16>, vector<4x16x64xbf16>, vector<4x8x64xf32> -> vector<4x8x64xf32>
    "tpu.trace_stop"() : () -> ()
    %cst_38 = arith.constant dense<0.000000e+00> : vector<8x64xf32>
    %45 = vector.multi_reduction <add>, %44, %cst_38 [0] : vector<4x8x64xf32> to vector<8x64xf32>
    %c0_39 = arith.constant 0 : index
    %c0_40 = arith.constant 0 : index
    %c0_41 = arith.constant 0 : index
    %46 = vector.load %arg11[%c0_39, %c0_40, %c0_41] : memref<1x1x64xf32, #tpu.memory_space<vmem>>, vector<1x1x64xf32>
    %47 = vector.shape_cast %46 : vector<1x1x64xf32> to vector<1x64xf32>
    %48 = vector.broadcast %47 : vector<1x64xf32> to vector<8x64xf32>
    %49 = arith.addf %45, %48 : vector<8x64xf32>
    %50 = arith.addf %3, %49 : vector<8x64xf32>
    %c0_42 = arith.constant 0 : index
    %c0_43 = arith.constant 0 : index
    %c0_44 = arith.constant 0 : index
    %51 = vector.load %arg12[%c0_42, %c0_43, %c0_44] : memref<1x1x64xf32, #tpu.memory_space<vmem>>, vector<1x1x64xf32>
    %52 = vector.shape_cast %51 : vector<1x1x64xf32> to vector<1x64xf32>
    %c0_45 = arith.constant 0 : index
    %c0_46 = arith.constant 0 : index
    %c0_47 = arith.constant 0 : index
    %53 = vector.load %arg13[%c0_45, %c0_46, %c0_47] : memref<1x1x64xf32, #tpu.memory_space<vmem>>, vector<1x1x64xf32>
    %54 = vector.shape_cast %53 : vector<1x1x64xf32> to vector<1x64xf32>
    %cst_48 = arith.constant dense<0.000000e+00> : vector<8xf32>
    %55 = vector.multi_reduction <add>, %50, %cst_48 [1] : vector<8x64xf32> to vector<8xf32>
    %56 = vector.shape_cast %55 : vector<8xf32> to vector<8x1xf32>
    %cst_49 = arith.constant 6.400000e+01 : f32
    %57 = vector.broadcast %cst_49 : f32 to vector<8x1xf32>
    %58 = arith.divf %56, %57 : vector<8x1xf32>
    %59 = vector.broadcast %58 : vector<8x1xf32> to vector<8x64xf32>
    %60 = arith.subf %50, %59 : vector<8x64xf32>
    %61 = arith.mulf %60, %60 : vector<8x64xf32>
    %cst_50 = arith.constant dense<0.000000e+00> : vector<8xf32>
    %62 = vector.multi_reduction <add>, %61, %cst_50 [1] : vector<8x64xf32> to vector<8xf32>
    %63 = vector.shape_cast %62 : vector<8xf32> to vector<8x1xf32>
    %cst_51 = arith.constant 6.400000e+01 : f32
    %64 = vector.broadcast %cst_51 : f32 to vector<8x1xf32>
    %65 = arith.divf %63, %64 : vector<8x1xf32>
    %66 = vector.broadcast %58 : vector<8x1xf32> to vector<8x64xf32>
    %67 = arith.subf %50, %66 : vector<8x64xf32>
    %cst_52 = arith.constant 9.99999974E-6 : f32
    %68 = vector.broadcast %cst_52 : f32 to vector<8x1xf32>
    %69 = arith.addf %65, %68 : vector<8x1xf32>
    %70 = math.rsqrt %69 : vector<8x1xf32>
    %71 = vector.broadcast %70 : vector<8x1xf32> to vector<8x64xf32>
    %72 = arith.mulf %67, %71 : vector<8x64xf32>
    %73 = vector.broadcast %52 : vector<1x64xf32> to vector<8x64xf32>
    %74 = arith.mulf %72, %73 : vector<8x64xf32>
    %75 = vector.broadcast %54 : vector<1x64xf32> to vector<8x64xf32>
    %76 = arith.addf %74, %75 : vector<8x64xf32>
    %77 = arith.truncf %76 : vector<8x64xf32> to vector<8x64xbf16>
    %c0_53 = arith.constant 0 : index
    %c0_54 = arith.constant 0 : index
    %c0_55 = arith.constant 0 : index
    %78 = vector.load %arg16[%c0_53, %c0_54, %c0_55] : memref<1x64x2048xbf16, #tpu.memory_space<vmem>>, vector<1x64x2048xbf16>
    %79 = vector.shape_cast %78 : vector<1x64x2048xbf16> to vector<64x2048xbf16>
    %cst_56 = arith.constant dense<0.000000e+00> : vector<8x2048xf32>
    %80 = tpu.matmul %77, %79, %cst_56 {dimension_numbers = #tpu.dot_dimension_numbers<[1], [0], [0], [1], [0, 0, 1, 1], [], []>} : vector<8x64xbf16>, vector<64x2048xbf16>, vector<8x2048xf32> -> vector<8x2048xf32>
    %c0_57 = arith.constant 0 : index
    %c0_58 = arith.constant 0 : index
    %c0_59 = arith.constant 0 : index
    %81 = vector.load %arg17[%c0_57, %c0_58, %c0_59] : memref<1x1x2048xf32, #tpu.memory_space<vmem>>, vector<1x1x2048xf32>
    %82 = vector.shape_cast %81 : vector<1x1x2048xf32> to vector<1x2048xf32>
    %83 = vector.broadcast %82 : vector<1x2048xf32> to vector<8x2048xf32>
    %84 = arith.addf %80, %83 : vector<8x2048xf32>
    %cst_60 = arith.constant 0.000000e+00 : f32
    %85 = vector.broadcast %cst_60 : f32 to vector<8x2048xf32>
    %86 = arith.maximumf %84, %85 : vector<8x2048xf32>
    %87 = arith.truncf %86 : vector<8x2048xf32> to vector<8x2048xbf16>
    %c0_61 = arith.constant 0 : index
    %c0_62 = arith.constant 0 : index
    %c0_63 = arith.constant 0 : index
    %88 = vector.load %arg18[%c0_61, %c0_62, %c0_63] : memref<1x2048x64xbf16, #tpu.memory_space<vmem>>, vector<1x2048x64xbf16>
    %89 = vector.shape_cast %88 : vector<1x2048x64xbf16> to vector<2048x64xbf16>
    %cst_64 = arith.constant dense<0.000000e+00> : vector<8x64xf32>
    %90 = tpu.matmul %87, %89, %cst_64 {dimension_numbers = #tpu.dot_dimension_numbers<[1], [0], [0], [1], [0, 0, 1, 1], [], []>} : vector<8x2048xbf16>, vector<2048x64xbf16>, vector<8x64xf32> -> vector<8x64xf32>
    %c0_65 = arith.constant 0 : index
    %c0_66 = arith.constant 0 : index
    %c0_67 = arith.constant 0 : index
    %91 = vector.load %arg19[%c0_65, %c0_66, %c0_67] : memref<1x1x64xf32, #tpu.memory_space<vmem>>, vector<1x1x64xf32>
    %92 = vector.shape_cast %91 : vector<1x1x64xf32> to vector<1x64xf32>
    %93 = vector.broadcast %92 : vector<1x64xf32> to vector<8x64xf32>
    %94 = arith.addf %90, %93 : vector<8x64xf32>
    %95 = arith.addf %76, %94 : vector<8x64xf32>
    %c0_68 = arith.constant 0 : index
    %c0_69 = arith.constant 0 : index
    %c0_70 = arith.constant 0 : index
    %96 = vector.load %arg14[%c0_68, %c0_69, %c0_70] : memref<1x1x64xf32, #tpu.memory_space<vmem>>, vector<1x1x64xf32>
    %97 = vector.shape_cast %96 : vector<1x1x64xf32> to vector<1x64xf32>
    %c0_71 = arith.constant 0 : index
    %c0_72 = arith.constant 0 : index
    %c0_73 = arith.constant 0 : index
    %98 = vector.load %arg15[%c0_71, %c0_72, %c0_73] : memref<1x1x64xf32, #tpu.memory_space<vmem>>, vector<1x1x64xf32>
    %99 = vector.shape_cast %98 : vector<1x1x64xf32> to vector<1x64xf32>
    %cst_74 = arith.constant dense<0.000000e+00> : vector<8xf32>
    %100 = vector.multi_reduction <add>, %95, %cst_74 [1] : vector<8x64xf32> to vector<8xf32>
    %101 = vector.shape_cast %100 : vector<8xf32> to vector<8x1xf32>
    %cst_75 = arith.constant 6.400000e+01 : f32
    %102 = vector.broadcast %cst_75 : f32 to vector<8x1xf32>
    %103 = arith.divf %101, %102 : vector<8x1xf32>
    %104 = vector.broadcast %103 : vector<8x1xf32> to vector<8x64xf32>
    %105 = arith.subf %95, %104 : vector<8x64xf32>
    %106 = arith.mulf %105, %105 : vector<8x64xf32>
    %cst_76 = arith.constant dense<0.000000e+00> : vector<8xf32>
    %107 = vector.multi_reduction <add>, %106, %cst_76 [1] : vector<8x64xf32> to vector<8xf32>
    %108 = vector.shape_cast %107 : vector<8xf32> to vector<8x1xf32>
    %cst_77 = arith.constant 6.400000e+01 : f32
    %109 = vector.broadcast %cst_77 : f32 to vector<8x1xf32>
    %110 = arith.divf %108, %109 : vector<8x1xf32>
    %111 = vector.broadcast %103 : vector<8x1xf32> to vector<8x64xf32>
    %112 = arith.subf %95, %111 : vector<8x64xf32>
    %cst_78 = arith.constant 9.99999974E-6 : f32
    %113 = vector.broadcast %cst_78 : f32 to vector<8x1xf32>
    %114 = arith.addf %110, %113 : vector<8x1xf32>
    %115 = math.rsqrt %114 : vector<8x1xf32>
    %116 = vector.broadcast %115 : vector<8x1xf32> to vector<8x64xf32>
    %117 = arith.mulf %112, %116 : vector<8x64xf32>
    %118 = vector.broadcast %97 : vector<1x64xf32> to vector<8x64xf32>
    %119 = arith.mulf %117, %118 : vector<8x64xf32>
    %120 = vector.broadcast %99 : vector<1x64xf32> to vector<8x64xf32>
    %121 = arith.addf %119, %120 : vector<8x64xf32>
    %c0_79 = arith.constant 0 : index
    %c0_80 = arith.constant 0 : index
    %122 = vector.load %arg25[%c0_79, %c0_80] : memref<8x64xf32, #tpu.memory_space<vmem>>, vector<8x64xf32>
    tpu.vector_store %arg25[%c0_79, %c0_80], %121 {strides = array<i32>} : memref<8x64xf32, #tpu.memory_space<vmem>>, vector<8x64xf32>,
    %c1_i32 = arith.constant 1 : i32
    %123 = arith.cmpi eq, %arg0, %c1_i32 : i32
    %124 = arith.extui %123 : i1 to i32
    %c0_i32_81 = arith.constant 0 : i32
    %125 = arith.cmpi ne, %124, %c0_i32_81 : i32
    scf.if %125 {
      %c0_82 = arith.constant 0 : index
      %c0_83 = arith.constant 0 : index
      %126 = vector.load %arg25[%c0_82, %c0_83] : memref<8x64xf32, #tpu.memory_space<vmem>>, vector<8x64xf32>
      %c0_84 = arith.constant 0 : index
      %c0_85 = arith.constant 0 : index
      %127 = vector.load %arg20[%c0_84, %c0_85] : memref<64x32xf32, #tpu.memory_space<vmem>>, vector<64x32xf32>
      %cst_86 = arith.constant dense<0.000000e+00> : vector<8x32xf32>
      %128 = tpu.matmul %126, %127, %cst_86 {dimension_numbers = #tpu.dot_dimension_numbers<[1], [0], [0], [1], [0, 0, 1, 1], [], []>} : vector<8x64xf32>, vector<64x32xf32>, vector<8x32xf32> -> vector<8x32xf32>
      %c0_87 = arith.constant 0 : index
      %c0_88 = arith.constant 0 : index
      %129 = vector.load %arg21[%c0_87, %c0_88] : memref<1x32xf32, #tpu.memory_space<vmem>>, vector<1x32xf32>
      %130 = vector.broadcast %129 : vector<1x32xf32> to vector<8x32xf32>
      %131 = arith.addf %128, %130 : vector<8x32xf32>
      %cst_89 = arith.constant 0.000000e+00 : f32
      %132 = vector.broadcast %cst_89 : f32 to vector<8x32xf32>
      %133 = arith.maximumf %131, %132 : vector<8x32xf32>
      %c0_90 = arith.constant 0 : index
      %c0_91 = arith.constant 0 : index
      %134 = vector.load %arg22[%c0_90, %c0_91] : memref<32x4xf32, #tpu.memory_space<vmem>>, vector<32x4xf32>
      %cst_92 = arith.constant dense<0.000000e+00> : vector<8x4xf32>
      %135 = tpu.matmul %133, %134, %cst_92 {dimension_numbers = #tpu.dot_dimension_numbers<[1], [0], [0], [1], [0, 0, 1, 1], [], []>} : vector<8x32xf32>, vector<32x4xf32>, vector<8x4xf32> -> vector<8x4xf32>
      %c0_93 = arith.constant 0 : index
      %c0_94 = arith.constant 0 : index
      %136 = vector.load %arg23[%c0_93, %c0_94] : memref<1x4xf32, #tpu.memory_space<vmem>>, vector<1x4xf32>
      %137 = vector.broadcast %136 : vector<1x4xf32> to vector<8x4xf32>
      %138 = arith.addf %135, %137 : vector<8x4xf32>
      %c0_95 = arith.constant 0 : index
      %c0_96 = arith.constant 0 : index
      %139 = vector.load %arg24[%c0_95, %c0_96] : memref<8x4xf32, #tpu.memory_space<vmem>>, vector<8x4xf32>
      tpu.vector_store %arg24[%c0_95, %c0_96], %138 {strides = array<i32>} : memref<8x4xf32, #tpu.memory_space<vmem>>, vector<8x4xf32>,
    } else {
    }
    return
  }
  func.func @transform_0(%arg0: i32) -> (i32, i32) {
    %c0_i32 = arith.constant 0 : i32
    %c0_i32_0 = arith.constant 0 : i32
    %c0_i32_1 = arith.constant 0 : i32
    return %c0_i32, %c0_i32_0 : i32, i32
  }
  func.func @transform_1(%arg0: i32) -> (i32, i32) {
    %c0_i32 = arith.constant 0 : i32
    %c0_i32_0 = arith.constant 0 : i32
    %c0_i32_1 = arith.constant 0 : i32
    return %c0_i32, %c0_i32_0 : i32, i32
  }
  func.func @transform_2(%arg0: i32) -> (i32, i32) {
    %c0_i32 = arith.constant 0 : i32
    %c0_i32_0 = arith.constant 0 : i32
    %c0_i32_1 = arith.constant 0 : i32
    return %c0_i32, %c0_i32_0 : i32, i32
  }
  func.func @transform_3(%arg0: i32) -> (i32, i32, i32, i32) {
    %c0_i32 = arith.constant 0 : i32
    %c0_i32_0 = arith.constant 0 : i32
    %c0_i32_1 = arith.constant 0 : i32
    %c0_i32_2 = arith.constant 0 : i32
    return %arg0, %c0_i32, %c0_i32_0, %c0_i32_1 : i32, i32, i32, i32
  }
  func.func @transform_4(%arg0: i32) -> (i32, i32, i32, i32) {
    %c0_i32 = arith.constant 0 : i32
    %c0_i32_0 = arith.constant 0 : i32
    %c0_i32_1 = arith.constant 0 : i32
    %c0_i32_2 = arith.constant 0 : i32
    return %arg0, %c0_i32, %c0_i32_0, %c0_i32_1 : i32, i32, i32, i32
  }
  func.func @transform_5(%arg0: i32) -> (i32, i32, i32, i32) {
    %c0_i32 = arith.constant 0 : i32
    %c0_i32_0 = arith.constant 0 : i32
    %c0_i32_1 = arith.constant 0 : i32
    %c0_i32_2 = arith.constant 0 : i32
    return %arg0, %c0_i32, %c0_i32_0, %c0_i32_1 : i32, i32, i32, i32
  }
  func.func @transform_6(%arg0: i32) -> (i32, i32, i32, i32) {
    %c0_i32 = arith.constant 0 : i32
    %c0_i32_0 = arith.constant 0 : i32
    %c0_i32_1 = arith.constant 0 : i32
    %c0_i32_2 = arith.constant 0 : i32
    return %arg0, %c0_i32, %c0_i32_0, %c0_i32_1 : i32, i32, i32, i32
  }
  func.func @transform_7(%arg0: i32) -> (i32, i32, i32, i32) {
    %c0_i32 = arith.constant 0 : i32
    %c0_i32_0 = arith.constant 0 : i32
    %c0_i32_1 = arith.constant 0 : i32
    %c0_i32_2 = arith.constant 0 : i32
    return %arg0, %c0_i32, %c0_i32_0, %c0_i32_1 : i32, i32, i32, i32
  }
  func.func @transform_8(%arg0: i32) -> (i32, i32, i32, i32) {
    %c0_i32 = arith.constant 0 : i32
    %c0_i32_0 = arith.constant 0 : i32
    %c0_i32_1 = arith.constant 0 : i32
    %c0_i32_2 = arith.constant 0 : i32
    return %arg0, %c0_i32, %c0_i32_0, %c0_i32_1 : i32, i32, i32, i32
  }
  func.func @transform_9(%arg0: i32) -> (i32, i32, i32, i32) {
    %c0_i32 = arith.constant 0 : i32
    %c0_i32_0 = arith.constant 0 : i32
    %c0_i32_1 = arith.constant 0 : i32
    %c0_i32_2 = arith.constant 0 : i32
    return %arg0, %c0_i32, %c0_i32_0, %c0_i32_1 : i32, i32, i32, i32
  }
  func.func @transform_10(%arg0: i32) -> (i32, i32, i32) {
    %c0_i32 = arith.constant 0 : i32
    %c0_i32_0 = arith.constant 0 : i32
    %c0_i32_1 = arith.constant 0 : i32
    return %arg0, %c0_i32, %c0_i32_0 : i32, i32, i32
  }
  func.func @transform_11(%arg0: i32) -> (i32, i32, i32) {
    %c0_i32 = arith.constant 0 : i32
    %c0_i32_0 = arith.constant 0 : i32
    %c0_i32_1 = arith.constant 0 : i32
    return %arg0, %c0_i32, %c0_i32_0 : i32, i32, i32
  }
  func.func @transform_12(%arg0: i32) -> (i32, i32, i32) {
    %c0_i32 = arith.constant 0 : i32
    %c0_i32_0 = arith.constant 0 : i32
    %c0_i32_1 = arith.constant 0 : i32
    return %arg0, %c0_i32, %c0_i32_0 : i32, i32, i32
  }
  func.func @transform_13(%arg0: i32) -> (i32, i32, i32) {
    %c0_i32 = arith.constant 0 : i32
    %c0_i32_0 = arith.constant 0 : i32
    %c0_i32_1 = arith.constant 0 : i32
    return %arg0, %c0_i32, %c0_i32_0 : i32, i32, i32
  }
  func.func @transform_14(%arg0: i32) -> (i32, i32, i32) {
    %c0_i32 = arith.constant 0 : i32
    %c0_i32_0 = arith.constant 0 : i32
    %c0_i32_1 = arith.constant 0 : i32
    return %arg0, %c0_i32, %c0_i32_0 : i32, i32, i32
  }
  func.func @transform_15(%arg0: i32) -> (i32, i32, i32) {
    %c0_i32 = arith.constant 0 : i32
    %c0_i32_0 = arith.constant 0 : i32
    %c0_i32_1 = arith.constant 0 : i32
    return %arg0, %c0_i32, %c0_i32_0 : i32, i32, i32
  }
  func.func @transform_16(%arg0: i32) -> (i32, i32, i32) {
    %c0_i32 = arith.constant 0 : i32
    %c0_i32_0 = arith.constant 0 : i32
    %c0_i32_1 = arith.constant 0 : i32
    return %arg0, %c0_i32, %c0_i32_0 : i32, i32, i32
  }
  func.func @transform_17(%arg0: i32) -> (i32, i32, i32) {
    %c0_i32 = arith.constant 0 : i32
    %c0_i32_0 = arith.constant 0 : i32
    %c0_i32_1 = arith.constant 0 : i32
    return %arg0, %c0_i32, %c0_i32_0 : i32, i32, i32
  }
  func.func @transform_18(%arg0: i32) -> (i32, i32, i32) {
    %c0_i32 = arith.constant 0 : i32
    %c0_i32_0 = arith.constant 0 : i32
    %c0_i32_1 = arith.constant 0 : i32
    return %arg0, %c0_i32, %c0_i32_0 : i32, i32, i32
  }
  func.func @transform_19(%arg0: i32) -> (i32, i32) {
    %c0_i32 = arith.constant 0 : i32
    %c0_i32_0 = arith.constant 0 : i32
    %c0_i32_1 = arith.constant 0 : i32
    return %c0_i32, %c0_i32_0 : i32, i32
  }
  func.func @transform_20(%arg0: i32) -> (i32, i32) {
    %c0_i32 = arith.constant 0 : i32
    %c0_i32_0 = arith.constant 0 : i32
    %c0_i32_1 = arith.constant 0 : i32
    return %c0_i32, %c0_i32_0 : i32, i32
  }
  func.func @transform_21(%arg0: i32) -> (i32, i32) {
    %c0_i32 = arith.constant 0 : i32
    %c0_i32_0 = arith.constant 0 : i32
    %c0_i32_1 = arith.constant 0 : i32
    return %c0_i32, %c0_i32_0 : i32, i32
  }
  func.func @transform_22(%arg0: i32) -> (i32, i32) {
    %c0_i32 = arith.constant 0 : i32
    %c0_i32_0 = arith.constant 0 : i32
    %c0_i32_1 = arith.constant 0 : i32
    return %c0_i32, %c0_i32_0 : i32, i32
  }
  func.func @transform_23(%arg0: i32) -> (i32, i32) {
    %c0_i32 = arith.constant 0 : i32
    %c0_i32_0 = arith.constant 0 : i32
    %c0_i32_1 = arith.constant 0 : i32
    return %c0_i32, %c0_i32_0 : i32, i32
  }
}

</mosaic_0001>

<bundles_post_ra>
// kernel: tpu_custom_call.1
= control target key start
LH: loop header
LB: loop body
LE: loop exit
PB: predicated region body
PF: predicated region fallthrough
CT: control target
= control target key end

     0   :  { %s7442_s0 = inlined_call_operand.vmem [shape: f32[8,16], index: 0, kind: input, shape index: {}]   ;;  %s7443_s1 = inlined_call_operand.vmem [shape: f32[16,64], index: 1, kind: input, shape index: {}]   ;;  %s7444_s2 = inlined_call_operand.vmem [shape: f32[1,64], index: 2, kind: input, shape index: {}]   ;;  %s7445_s3 = inlined_call_operand.vmem [shape: bf16[2,4,64,16], index: 3, kind: input, shape index: {}]   ;;  %s7446_s4 = inlined_call_operand.vmem [shape: bf16[2,4,64,16], index: 4, kind: input, shape index: {}]   ;;  %s7447_s5 = inlined_call_operand.vmem [shape: bf16[2,4,64,16], index: 5, kind: input, shape index: {}]   ;;  %s7448_s6 = inlined_call_operand.vmem [shape: f32[2,4,1,16], index: 6, kind: input, shape index: {}]   ;;  %s7449_s7 = inlined_call_operand.vmem [shape: f32[2,4,1,16], index: 7, kind: input, shape index: {}]   ;;  %s7450_s8 = inlined_call_operand.vmem [shape: f32[2,4,1,16], index: 8, kind: input, shape index: {}]   ;;  %s7451_s9 = inlined_call_operand.vmem [shape: bf16[2,4,16,64], index: 9, kind: input, shape index: {}]   ;;  %s7452_s10 = inlined_call_operand.vmem [shape: f32[2,1,64], index: 10, kind: input, shape index: {}]   ;;  %s7453_s11 = inlined_call_operand.vmem [shape: f32[2,1,64], index: 11, kind: input, shape index: {}]   ;;  %s7454_s12 = inlined_call_operand.vmem [shape: f32[2,1,64], index: 12, kind: input, shape index: {}]   ;;  %s7455_s13 = inlined_call_operand.vmem [shape: f32[2,1,64], index: 13, kind: input, shape index: {}]   ;;  %s7456_s14 = inlined_call_operand.vmem [shape: f32[2,1,64], index: 14, kind: input, shape index: {}]   ;;  %s7457_s15 = inlined_call_operand.vmem [shape: bf16[2,64,2048], index: 15, kind: input, shape index: {}]   ;;  %s7458_s16 = inlined_call_operand.vmem [shape: f32[2,1,2048], index: 16, kind: input, shape index: {}]   ;;  %s7459_s17 = inlined_call_operand.vmem [shape: bf16[2,2048,64], index: 17, kind: input, shape index: {}]   ;;  %s7460_s18 = inlined_call_operand.vmem [shape: f32[2,1,64], index: 18, kind: input, shape index: {}]   ;;  %s7461_s19 = inlined_call_operand.vmem [shape: f32[64,32], index: 19, kind: input, shape index: {}]   ;;  %s7462_s20 = inlined_call_operand.vmem [shape: f32[1,32], index: 20, kind: input, shape index: {}]   ;;  %s7463_s21 = inlined_call_operand.vmem [shape: f32[32,4], index: 21, kind: input, shape index: {}]   ;;  %s7464_s22 = inlined_call_operand.vmem [shape: f32[1,4], index: 22, kind: input, shape index: {}]   ;;  %s7465_s23 = inlined_call_operand.vmem [shape: f32[8,4], index: 23, kind: output, shape index: {}]  }
   0x1   :  { %7474 = sst [smem:[#allocation8_spill]] %s7442_s0 }
   0x2   :  { %7475 = sst [smem:[#allocation9_spill]] %s7443_s1 }
   0x3   :  { %7476 = sst [smem:[#allocation10_spill]] %s7444_s2 }
   0x4   :  { %7477 = sst [smem:[#allocation11_spill]] %s7445_s3 }
   0x5   :  { %7478 = sst [smem:[#allocation12_spill]] %s7446_s4  ;;  %s6711_s4 = smov 0  }
   0x6   :  { %7479 = sst [smem:[#allocation13_spill]] %s7447_s5 }
   0x7   :  { %7480 = sst [smem:[#allocation14_spill]] %s7448_s6 }
   0x8   :  { %7481 = sst [smem:[#allocation15_spill]] %s7449_s7 }
   0x9   :  { %7482 = sst [smem:[#allocation16_spill]] %s7450_s8 }
   0xa   :  { %7483 = sst [smem:[#allocation17_spill]] %s7461_s19 }
   0xb   :  { %7484 = sst [smem:[#allocation18_spill]] %s7462_s20 }
   0xc   :  { %7485 = sst [smem:[#allocation19_spill]] %s7463_s21 }
   0xd   :  { %7486 = sst [smem:[#allocation20_spill]] %s7464_s22 }
   0xe   :  { %7487 = sst [smem:[#allocation21_spill]] %s7465_s23 }
   0xf LB: > { %7488 = sst [smem:[#allocation3_spill]] %s6580_s4  ;;  %s6717_s30 = sadd.s32 4294967295, %s6580_s4   ;;  %s6580_s4 = sphi %s6711_s4, %s33_s4  }
  0x10   : > { %p5482_p0 = scmp.ge.s32.totalorder %s6580_s4, 1  ;;  %p766_p1 = scmp.lt.s32.totalorder %s6580_s4, 3 }
  0x12   : > { %p767_p2 = pnand %p5482_p0, %p766_p1 }
  0x14   : > { %770 = sbr.rel (%p767_p2) target bundleno = 3128 (0xc38), region = 112 }
  0x1b   : > { %p884_p3 = scmp.lt.s32.totalorder %s6717_s30, 1  ;;  %s7489_s2 = sld [smem:[#allocation11_spill]] }
  0x1c   : > { %s7491_s28 = sld [smem:[#allocation12_spill]]  ;;  %s7492_s4 = sld [smem:[#allocation13_spill]] }
  0x1d   : > { %s6723_s24 = scalar_select %p884_p3, %s6717_s30, 1 }
  0x1e   : > { %s7494_s21 = sld [smem:[#allocation14_spill]]  ;;  %s7497_s8 = sld [smem:[#allocation16_spill]] }
  0x1f   : > { %s5807_s25 = sshll.u32 %s6723_s24, 7  ;;  %s5489_s5 = sshll.u32 %s6723_s24, 2 }
  0x20   : > { %s5810_s3 = sshll.u32 %s6723_s24, 5  ;;  %s5496_s22 = sshll.u32 %s6723_s24, 4 }
  0x21   : > { %s6730_s6 = scalar_lea.vmem %s7489_s2, %s5807_s25  ;;  %s7496_s2 = sld [smem:[#allocation15_spill]] }
  0x22   : > { %7490 = sst [smem:[#allocation4_spill]] %s6730_s6  ;;  %s6735_s29 = scalar_lea.vmem %s7491_s28, %s5807_s25 }
  0x23   : > { %s6740_s23 = scalar_lea.vmem %s7492_s4, %s5807_s25  ;;  %s5811_s25 = sshll.u32 %s6723_s24, 9 }
  0x24   : > { %7493 = sst [smem:[#allocation5_spill]] %s6740_s23  ;;  %s6745_s19 = scalar_lea.vmem %s7494_s21, %s5489_s5 }
  0x25   : > { %7495 = sst [smem:[#allocation6_spill]] %s6745_s19  ;;  %s6755_s28 = scalar_lea.vmem %s7497_s8, %s5489_s5 }
  0x26   : > { %7498 = sst [smem:[#allocation7_spill]] %s6755_s28  ;;  %s6765_s21 = scalar_lea.vmem %s7451_s9, %s5810_s3 }
  0x27   : > { %s6750_s6 = scalar_lea.vmem %s7496_s2, %s5489_s5  ;;  %s927_s8 = scalar_lea.vmem %s7455_s13, %s6723_s24 }
  0x28   : > { %s6787_s20 = scalar_lea.vmem %s7457_s15, %s5811_s25  ;;  %s6793_s19 = scalar_lea.vmem %s7458_s16, %s5496_s22 }
  0x29   : > { %s5812_s2 = sshll.u32 %s6723_s24, 10  ;;  %s947_s4 = scalar_lea.vmem %s7460_s18, %s6723_s24 }
  0x2a   : > { %s6799_s7 = scalar_lea.vmem %s7459_s17, %s5812_s2  ;;  %p5499_p4 = scmp.ne.s32.totalorder %s6717_s30, 0 }
  0x2b   : > { %s7499_s3 = sld [smem:[#allocation9_spill]] (!%p5499_p4)  ;;  %v6582_v2 = vmov (!%p5499_p4), 0.0|0.0   ;;  %vm6583_vm0 = vmmov (!%p5499_p4), 0   ;;  %v6584_v4 = vmov (!%p5499_p4), 0.0   ;;  %s7500_s2 = sld [smem:[#allocation8_spill]] (!%p5499_p4)  ;;  %vm963_vm1 = vcmask (!%p5499_p4), 130048  }
  0x2c   : > { %952 = sbr.rel (%p5499_p4) target bundleno = 272 (0x110), region = 116  ;;  %6335 = vmatprep.subr.bf16.mxu0 (!%p5499_p4), %v6582_v2  ;;  %6094 = vmatprep.mubr.msk.f32.mxu0 (!%p5499_p4), %vm6583_vm0, %v6584_v4  ;;  %s7501_s0 = sld [smem:[#allocation10_spill]] (!%p5499_p4)  ;;  %vm1038_vm2 = vcmask (!%p5499_p4), 523264  }
  0x31   : > { %v954_v0 = vld [vmem:[%s7499_s3] sm:$0xff] (!%p5499_p4)  ;;  %v955_v1 = vld [vmem:[%s7499_s3 + $0x8] sm:$0xff] (!%p5499_p4) }
  0x32   : > { %v6336_v3 = vpack.c.bf16 (!%p5499_p4), %v955_v1, %v954_v0  ;;  %v953_v5 = vld [vmem:[%s7500_s2] sm:$0xff] (!%p5499_p4) }
  0x33   : > { %v5500_v6 = vld [vmem:[%s7501_s0] ss:$0 sm:$0xff] }
  0x34   : > { %6337 = vmatpush3.bf16.msra.mxu0 %v6336_v3 }
  0x37   : > { %6095 = vmatmul.mubr.msk.f32.vlgmr.msra.gmra.mrb[0].mxu0 %vm963_vm1, %v953_v5 }
 0x10a   : > { %v1033_v7 = vpop.f32.mrb[0].mxu0 }
 0x10b   : > { %v1034_v8 = vadd.f32 %v5500_v6, %v1033_v7  ;;  %v6096_v9 = vpop.f32.mrb[1].mxu0 }
 0x10d   : > { %v1037_v10 = vmax.f32 %v1034_v8, 0.0 }
 0x10f   : > { %1039 = vst.msk [vmem:[#allocation2] sm:$0xff] %vm1038_vm2, %v1037_v10 }
 0x110 PF: > { %s7502_s25 = sld [smem:[#allocation4_spill]]  ;;  %v6585_v12 = vmov 0.0   ;;  %vm6586_vm3 = vmmov 0   ;;  %vm1126_vm4 = vcmask 523264   ;;  %v6389_v30 = vld [vmem:[%s6735_s29] sm:$0xff]   ;;  %v6391_v32 = vld [vmem:[%s6735_s29 + $0x8] sm:$0xff]   ;;  %s7506_s22 = scalar_lea.vmem %s7452_s10, %s6723_s24 }
 0x111   : > { %6097 = vmatprep.subr.bf16.mxu0 %v6585_v12  ;;  %6109 = vmatprep.subr.bf16.mxu1 %v6585_v12  ;;  %v6390_v31 = vld [vmem:[%s6735_s29 + $0x20] sm:$0xff]   ;;  %v6392_v33 = vld [vmem:[%s6735_s29 + $0x28] sm:$0xff]   ;;  %v6393_v34 = vld [vmem:[%s6735_s29 + $0x10] sm:$0xff]   ;;  %s7503_s23 = sld [smem:[#allocation5_spill]]  ;;  %vm1994_vm5 = vcmask 130048   ;;  %s7505_s26 = sld [smem:[#allocation7_spill]] }
 0x112   : > { %6105 = vmatprep.mubr.msk.bf16.mxu0 %vm6586_vm3, %v6585_v12  ;;  %6117 = vmatprep.mubr.msk.bf16.mxu1 %vm6586_vm3, %v6585_v12  ;;  %v6394_v35 = vld [vmem:[%s6735_s29 + $0x30] sm:$0xff]   ;;  %v6395_v36 = vld [vmem:[%s6735_s29 + $0x18] sm:$0xff]   ;;  %v6397_v38 = vld [vmem:[%s6735_s29 + $0x40] sm:$0xff]   ;;  %vm2303_vm6 = vcmask 64512   ;;  %s7507_s2 = scalar_lea.vmem %s7453_s11, %s6723_s24  ;;  %s7508_s0 = scalar_lea.vmem %s7454_s12, %s6723_s24 }
 0x113   : > { %v6396_v37 = vld [vmem:[%s6735_s29 + $0x38] sm:$0xff]   ;;  %v6398_v39 = vld [vmem:[%s6735_s29 + $0x60] sm:$0xff]   ;;  %v6399_v40 = vld [vmem:[%s6735_s29 + $0x48] sm:$0xff]   ;;  %p5800_p5 = scmp.ne.s32.totalorder %s6717_s30, 1 }
 0x114   : > { %v6400_v41 = vld [vmem:[%s6735_s29 + $0x68] sm:$0xff]   ;;  %v6401_v42 = vld [vmem:[%s6735_s29 + $0x50] sm:$0xff]   ;;  %v6403_v44 = vld [vmem:[%s6735_s29 + $0x58] sm:$0xff]   ;;  %vm6589_vm7 = vmmov (!%p5800_p5), 0   ;;  %s7511_s28 = sld [smem:[#allocation19_spill]] (!%p5800_p5)  ;;  %s7512_s30 = sld [smem:[#allocation18_spill]] (!%p5800_p5) }
 0x115   : > { %v6402_v43 = vld [vmem:[%s6735_s29 + $0x70] sm:$0xff]   ;;  %v6404_v45 = vld [vmem:[%s6735_s29 + $0x78] sm:$0xff]   ;;  %s7504_s29 = sld [smem:[#allocation6_spill]]  ;;  %vm5213_vm8 = vcmask (!%p5800_p5), 261120   ;;  %vm5287_vm9 = vcmask (!%p5800_p5), 31744  }
 0x116   : > { %v6373_v11 = vld [vmem:[%s7502_s25] sm:$0xff]   ;;  %v6375_v14 = vld [vmem:[%s7502_s25 + $0x8] sm:$0xff]   ;;  %v6377_v16 = vld [vmem:[%s7502_s25 + $0x10] sm:$0xff]  }
 0x117   : > { %v6374_v13 = vld [vmem:[%s7502_s25 + $0x20] sm:$0xff]   ;;  %6098 = vmatpush3.bf16.msra.mxu0 %v6373_v11  ;;  %v6376_v15 = vld [vmem:[%s7502_s25 + $0x28] sm:$0xff]   ;;  %v6378_v17 = vld [vmem:[%s7502_s25 + $0x30] sm:$0xff]  }
 0x118   : > { %6110 = vmatpush3.bf16.msra.mxu1 %v6374_v13  ;;  %6099 = vmatprep.subr.bf16.mxu0 %v6585_v12  ;;  %v6379_v18 = vld [vmem:[%s7502_s25 + $0x18] sm:$0xff]   ;;  %v1040_v19 = vld [vmem:[#allocation2] sm:$0xff]  ;;  %v6383_v24 = vld [vmem:[%s7502_s25 + $0x48] sm:$0xff]  }
 0x119   : > { %6111 = vmatprep.subr.bf16.mxu1 %v6585_v12  ;;  %v6380_v20 = vld [vmem:[%s7502_s25 + $0x38] sm:$0xff]   ;;  %v6838_v21 = vpack.c.bf16 %v1040_v19, %v1040_v19  ;;  %v6381_v22 = vld [vmem:[%s7502_s25 + $0x40] sm:$0xff]   ;;  %v6384_v25 = vld [vmem:[%s7502_s25 + $0x68] sm:$0xff]  }
 0x11a   : > { %v6382_v23 = vld [vmem:[%s7502_s25 + $0x60] sm:$0xff]   ;;  %v6385_v26 = vld [vmem:[%s7502_s25 + $0x50] sm:$0xff]   ;;  %v6387_v28 = vld [vmem:[%s7502_s25 + $0x58] sm:$0xff]  }
 0x11b   : > { %6100 = vmatpush3.bf16.msra.mxu0 %v6375_v14  ;;  %v6386_v27 = vld [vmem:[%s7502_s25 + $0x70] sm:$0xff]   ;;  %v6388_v29 = vld [vmem:[%s7502_s25 + $0x78] sm:$0xff]   ;;  %v6405_v46 = vld [vmem:[%s7503_s23] sm:$0xff]  }
 0x11c   : > { %6112 = vmatpush3.bf16.msra.mxu1 %v6376_v15  ;;  %6101 = vmatprep.subr.bf16.mxu0 %v6585_v12  ;;  %v6406_v47 = vld [vmem:[%s7503_s23 + $0x20] sm:$0xff]   ;;  %v6407_v48 = vld [vmem:[%s7503_s23 + $0x8] sm:$0xff]   ;;  %v6409_v50 = vld [vmem:[%s7503_s23 + $0x10] sm:$0xff]  }
 0x11d   : > { %6113 = vmatprep.subr.bf16.mxu1 %v6585_v12  ;;  %v6408_v49 = vld [vmem:[%s7503_s23 + $0x28] sm:$0xff]   ;;  %v6410_v51 = vld [vmem:[%s7503_s23 + $0x30] sm:$0xff]   ;;  %v6411_v52 = vld [vmem:[%s7503_s23 + $0x18] sm:$0xff]  }
 0x11e   : > { %v6412_v53 = vld [vmem:[%s7503_s23 + $0x38] sm:$0xff]   ;;  %v6413_v54 = vld [vmem:[%s7503_s23 + $0x40] sm:$0xff]   ;;  %v6415_v56 = vld [vmem:[%s7503_s23 + $0x48] sm:$0xff]  }
 0x11f   : > { %6102 = vmatpush3.bf16.msra.mxu0 %v6377_v16  ;;  %v6414_v55 = vld [vmem:[%s7503_s23 + $0x60] sm:$0xff]   ;;  %v6416_v57 = vld [vmem:[%s7503_s23 + $0x68] sm:$0xff]   ;;  %v6417_v58 = vld [vmem:[%s7503_s23 + $0x50] sm:$0xff]  }
 0x120   : > { %6114 = vmatpush3.bf16.msra.mxu1 %v6378_v17  ;;  %6103 = vmatprep.subr.bf16.mxu0 %v6585_v12  ;;  %v6418_v59 = vld [vmem:[%s7503_s23 + $0x70] sm:$0xff]   ;;  %v6419_v60 = vld [vmem:[%s7503_s23 + $0x58] sm:$0xff]   ;;  %v5526_v15 = vld [vmem:[%s6750_s6] ss:$0 sm:$0xff] }
 0x121   : > { %6115 = vmatprep.subr.bf16.mxu1 %v6585_v12  ;;  %v6420_v61 = vld [vmem:[%s7503_s23 + $0x78] sm:$0xff]   ;;  %v5527_v16 = vld [vmem:[%s6750_s6 + $0x1] ss:$0 sm:$0xff] }
 0x123   : > { %6104 = vmatpush3.bf16.msra.mxu0 %v6379_v18  ;;  %v5502_v18 = vld [vmem:[%s7504_s29] ss:$0 sm:$0xff] }
 0x124   : > { %6116 = vmatpush3.bf16.msra.mxu1 %v6380_v20  ;;  %6121 = vmatprep.subr.bf16.mxu0 %v6585_v12 }
 0x125   : > { %6133 = vmatprep.subr.bf16.mxu1 %v6585_v12 }
 0x126   : > { %6106 = vmatmul.mubr.msk.bf16.vlgmr.msra.gmra.mrb[0].mxu0 %vm1126_vm4, %v6838_v21 }
 0x127   : > { %6118 = vmatmul.mubr.msk.bf16.vlgmr.msra.gmra.mrb[0].mxu1 %vm1126_vm4, %v6838_v21  ;;  %6122 = vmatpush3.bf16.msra.mxu0 %v6381_v22  ;;  %v5503_v22 = vld [vmem:[%s7504_s29 + $0x1] ss:$0 sm:$0xff] }
 0x128   : > { %6134 = vmatpush3.bf16.msra.mxu1 %v6382_v23  ;;  %6123 = vmatprep.subr.bf16.mxu0 %v6585_v12 }
 0x129   : > { %6135 = vmatprep.subr.bf16.mxu1 %v6585_v12  ;;  %6129 = vmatprep.mubr.msk.bf16.mxu0 %vm6586_vm3, %v6585_v12 }
 0x12a   : > { %6141 = vmatprep.mubr.msk.bf16.mxu1 %vm6586_vm3, %v6585_v12 }
 0x12b   : > { %6124 = vmatpush3.bf16.msra.mxu0 %v6383_v24 }
 0x12c   : > { %6136 = vmatpush3.bf16.msra.mxu1 %v6384_v25  ;;  %6125 = vmatprep.subr.bf16.mxu0 %v6585_v12 }
 0x12d   : > { %6137 = vmatprep.subr.bf16.mxu1 %v6585_v12 }
 0x12f   : > { %6126 = vmatpush3.bf16.msra.mxu0 %v6385_v26 }
 0x130   : > { %6138 = vmatpush3.bf16.msra.mxu1 %v6386_v27  ;;  %6127 = vmatprep.subr.bf16.mxu0 %v6585_v12 }
 0x131   : > { %6139 = vmatprep.subr.bf16.mxu1 %v6585_v12 }
 0x133   : > { %6128 = vmatpush3.bf16.msra.mxu0 %v6387_v28 }
 0x134   : > { %6140 = vmatpush3.bf16.msra.mxu1 %v6388_v29  ;;  %6145 = vmatprep.subr.bf16.mxu0 %v6585_v12 }
 0x135   : > { %6157 = vmatprep.subr.bf16.mxu1 %v6585_v12 }
 0x136   : > { %6130 = vmatmul.mubr.msk.bf16.vlgmr.msra.gmra.mrb[4].mxu0 %vm1126_vm4, %v6838_v21 }
 0x137   : > { %6142 = vmatmul.mubr.msk.bf16.vlgmr.msra.gmra.mrb[4].mxu1 %vm1126_vm4, %v6838_v21  ;;  %6146 = vmatpush3.bf16.msra.mxu0 %v6389_v30 }
 0x138   : > { %6158 = vmatpush3.bf16.msra.mxu1 %v6390_v31  ;;  %6147 = vmatprep.subr.bf16.mxu0 %v6585_v12  ;;  %v5528_v31 = vld [vmem:[%s6750_s6 + $0x2] ss:$0 sm:$0xff] }
 0x139   : > { %6159 = vmatprep.subr.bf16.mxu1 %v6585_v12  ;;  %6153 = vmatprep.mubr.msk.bf16.mxu0 %vm6586_vm3, %v6585_v12 }
 0x13a   : > { %6165 = vmatprep.mubr.msk.bf16.mxu1 %vm6586_vm3, %v6585_v12 }
 0x13b   : > { %6148 = vmatpush3.bf16.msra.mxu0 %v6391_v32  ;;  %v5529_v32 = vld [vmem:[%s6750_s6 + $0x3] ss:$0 sm:$0xff] }
 0x13c   : > { %6160 = vmatpush3.bf16.msra.mxu1 %v6392_v33  ;;  %6149 = vmatprep.subr.bf16.mxu0 %v6585_v12 }
 0x13d   : > { %6161 = vmatprep.subr.bf16.mxu1 %v6585_v12 }
 0x13f   : > { %6150 = vmatpush3.bf16.msra.mxu0 %v6393_v34  ;;  %v5504_v34 = vld [vmem:[%s7504_s29 + $0x2] ss:$0 sm:$0xff] }
 0x140   : > { %6162 = vmatpush3.bf16.msra.mxu1 %v6394_v35  ;;  %6151 = vmatprep.subr.bf16.mxu0 %v6585_v12 }
 0x141   : > { %6163 = vmatprep.subr.bf16.mxu1 %v6585_v12 }
 0x143   : > { %6152 = vmatpush3.bf16.msra.mxu0 %v6395_v36 }
 0x144   : > { %6164 = vmatpush3.bf16.msra.mxu1 %v6396_v37  ;;  %6169 = vmatprep.subr.bf16.mxu0 %v6585_v12 }
 0x145   : > { %6181 = vmatprep.subr.bf16.mxu1 %v6585_v12 }
 0x146   : > { %6154 = vmatmul.mubr.msk.bf16.vlgmr.msra.gmra.mrb[8].mxu0 %vm1126_vm4, %v6838_v21 }
 0x147   : > { %6166 = vmatmul.mubr.msk.bf16.vlgmr.msra.gmra.mrb[8].mxu1 %vm1126_vm4, %v6838_v21  ;;  %6170 = vmatpush3.bf16.msra.mxu0 %v6397_v38  ;;  %v5505_v38 = vld [vmem:[%s7504_s29 + $0x3] ss:$0 sm:$0xff]  ;;  %s7509_s29 = scalar_lea.vmem %s7456_s14, %s6723_s24 }
 0x148   : > { %6182 = vmatpush3.bf16.msra.mxu1 %v6398_v39  ;;  %6171 = vmatprep.subr.bf16.mxu0 %v6585_v12 }
 0x149   : > { %6183 = vmatprep.subr.bf16.mxu1 %v6585_v12  ;;  %6177 = vmatprep.mubr.msk.bf16.mxu0 %vm6586_vm3, %v6585_v12 }
 0x14a   : > { %6189 = vmatprep.mubr.msk.bf16.mxu1 %vm6586_vm3, %v6585_v12 }
 0x14b   : > { %6172 = vmatpush3.bf16.msra.mxu0 %v6399_v40 }
 0x14c   : > { %6184 = vmatpush3.bf16.msra.mxu1 %v6400_v41  ;;  %6173 = vmatprep.subr.bf16.mxu0 %v6585_v12 }
 0x14d   : > { %6185 = vmatprep.subr.bf16.mxu1 %v6585_v12 }
 0x14f   : > { %6174 = vmatpush3.bf16.msra.mxu0 %v6401_v42 }
 0x150   : > { %6186 = vmatpush3.bf16.msra.mxu1 %v6402_v43  ;;  %6175 = vmatprep.subr.bf16.mxu0 %v6585_v12 }
 0x151   : > { %6187 = vmatprep.subr.bf16.mxu1 %v6585_v12 }
 0x153   : > { %6176 = vmatpush3.bf16.msra.mxu0 %v6403_v44 }
 0x154   : > { %6188 = vmatpush3.bf16.msra.mxu1 %v6404_v45  ;;  %6193 = vmatprep.subr.bf16.mxu0 %v6585_v12 }
 0x155   : > { %6205 = vmatprep.subr.bf16.mxu1 %v6585_v12 }
 0x156   : > { %6178 = vmatmul.mubr.msk.bf16.vlgmr.msra.gmra.mrb[12].mxu0 %vm1126_vm4, %v6838_v21 }
 0x157   : > { %6190 = vmatmul.mubr.msk.bf16.vlgmr.msra.gmra.mrb[12].mxu1 %vm1126_vm4, %v6838_v21  ;;  %6194 = vmatpush3.bf16.msra.mxu0 %v6405_v46 }
 0x158   : > { %6206 = vmatpush3.bf16.msra.mxu1 %v6406_v47  ;;  %6195 = vmatprep.subr.bf16.mxu0 %v6585_v12  ;;  %v5550_v47 = vld [vmem:[%s7505_s26] ss:$0 sm:$0xff] }
 0x159   : > { %6207 = vmatprep.subr.bf16.mxu1 %v6585_v12  ;;  %6201 = vmatprep.mubr.msk.bf16.mxu0 %vm6586_vm3, %v6585_v12 }
 0x15a   : > { %6213 = vmatprep.mubr.msk.bf16.mxu1 %vm6586_vm3, %v6585_v12 }
 0x15b   : > { %6196 = vmatpush3.bf16.msra.mxu0 %v6407_v48  ;;  %v5551_v48 = vld [vmem:[%s7505_s26 + $0x1] ss:$0 sm:$0xff] }
 0x15c   : > { %6208 = vmatpush3.bf16.msra.mxu1 %v6408_v49  ;;  %6197 = vmatprep.subr.bf16.mxu0 %v6585_v12 }
 0x15d   : > { %6209 = vmatprep.subr.bf16.mxu1 %v6585_v12 }
 0x15f   : > { %6198 = vmatpush3.bf16.msra.mxu0 %v6409_v50 }
 0x160   : > { %6210 = vmatpush3.bf16.msra.mxu1 %v6410_v51  ;;  %6199 = vmatprep.subr.bf16.mxu0 %v6585_v12 }
 0x161   : > { %6211 = vmatprep.subr.bf16.mxu1 %v6585_v12 }
 0x163   : > { %6200 = vmatpush3.bf16.msra.mxu0 %v6411_v52 }
 0x164   : > { %6212 = vmatpush3.bf16.msra.mxu1 %v6412_v53  ;;  %6217 = vmatprep.subr.bf16.mxu0 %v6585_v12 }
 0x165   : > { %6229 = vmatprep.subr.bf16.mxu1 %v6585_v12 }
 0x166   : > { %6202 = vmatmul.mubr.msk.bf16.vlgmr.msra.gmra.mrb[16].mxu0 %vm1126_vm4, %v6838_v21 }
 0x167   : > { %6214 = vmatmul.mubr.msk.bf16.vlgmr.msra.gmra.mrb[16].mxu1 %vm1126_vm4, %v6838_v21  ;;  %6218 = vmatpush3.bf16.msra.mxu0 %v6413_v54 }
 0x168   : > { %6230 = vmatpush3.bf16.msra.mxu1 %v6414_v55  ;;  %6219 = vmatprep.subr.bf16.mxu0 %v6585_v12 }
 0x169   : > { %6231 = vmatprep.subr.bf16.mxu1 %v6585_v12  ;;  %6225 = vmatprep.mubr.msk.bf16.mxu0 %vm6586_vm3, %v6585_v12 }
 0x16a   : > { %6237 = vmatprep.mubr.msk.bf16.mxu1 %vm6586_vm3, %v6585_v12 }
 0x16b   : > { %6220 = vmatpush3.bf16.msra.mxu0 %v6415_v56 }
 0x16c   : > { %6232 = vmatpush3.bf16.msra.mxu1 %v6416_v57  ;;  %6221 = vmatprep.subr.bf16.mxu0 %v6585_v12 }
 0x16d   : > { %6233 = vmatprep.subr.bf16.mxu1 %v6585_v12 }
 0x16f   : > { %6222 = vmatpush3.bf16.msra.mxu0 %v6417_v58 }
 0x170   : > { %6234 = vmatpush3.bf16.msra.mxu1 %v6418_v59  ;;  %6223 = vmatprep.subr.bf16.mxu0 %v6585_v12 }
 0x171   : > { %6235 = vmatprep.subr.bf16.mxu1 %v6585_v12 }
 0x173   : > { %6224 = vmatpush3.bf16.msra.mxu0 %v6419_v60 }
 0x174   : > { %6236 = vmatpush3.bf16.msra.mxu1 %v6420_v61  ;;  %6241 = vmatprep.subr.mxu0 %v6585_v12 }
 0x175   : > { %6246 = vmatprep.subr.mxu1 %v6585_v12 }
 0x176   : > { %6226 = vmatmul.mubr.msk.bf16.vlgmr.msra.gmra.mrb[20].mxu0 %vm1126_vm4, %v6838_v21 }
 0x177   : > { %6238 = vmatmul.mubr.msk.bf16.vlgmr.msra.gmra.mrb[20].mxu1 %vm1126_vm4, %v6838_v21  ;;  %6243 = vmatprep.mubr.msk.f32.mxu0 %vm6586_vm3, %v6585_v12 }
 0x178   : > { %6248 = vmatprep.mubr.msk.f32.mxu1 %vm6586_vm3, %v6585_v12 }
 0x1f9   : > { %v1164_v62 = vpop.f32.mrb[0].mxu0 }
 0x1fa   : > { %v6107_v63 = vpop.f32.mrb[1].mxu0  ;;  %v1228_v0 = vpop.f32.mrb[0].mxu1  ;;  %v1165_v28 = vadd.f32 %v5502_v18, %v1164_v62 }
 0x1fb   : > { %v1167_v1 = vpop.f32.mrb[2].mxu0  ;;  %v6119_v2 = vpop.f32.mrb[1].mxu1  ;;  %v1229_v30 = vadd.f32 %v5503_v22, %v1228_v0 }
 0x1fc   : > { %v6108_v3 = vpop.f32.mrb[3].mxu0  ;;  %v1231_v4 = vpop.f32.mrb[2].mxu1 }
 0x1fd   : > { %v6120_v5 = vpop.f32.mrb[3].mxu1 }
 0x209   : > { %v1292_v6 = vpop.f32.mrb[4].mxu0 }
 0x20a   : > { %v6131_v7 = vpop.f32.mrb[5].mxu0  ;;  %v1356_v8 = vpop.f32.mrb[4].mxu1  ;;  %v1293_v44 = vadd.f32 %v5504_v34, %v1292_v6 }
 0x20b   : > { %v1295_v9 = vpop.f32.mrb[6].mxu0  ;;  %v6143_v10 = vpop.f32.mrb[5].mxu1  ;;  %v1357_v46 = vadd.f32 %v5505_v38, %v1356_v8 }
 0x20c   : > { %v6132_v11 = vpop.f32.mrb[7].mxu0  ;;  %v1359_v13 = vpop.f32.mrb[6].mxu1 }
 0x20d   : > { %v6144_v14 = vpop.f32.mrb[7].mxu1 }
 0x219   : > { %v1480_v17 = vpop.f32.mrb[8].mxu0 }
 0x21a   : > { %v1481_v19 = vadd.f32 %v5526_v15, %v1480_v17  ;;  %v1544_v20 = vpop.f32.mrb[8].mxu1  ;;  %v6155_v21 = vpop.f32.mrb[9].mxu0 }
 0x21b   : > { %v1545_v23 = vadd.f32 %v5527_v16, %v1544_v20  ;;  %v1483_v24 = vpop.f32.mrb[10].mxu0  ;;  %v6167_v25 = vpop.f32.mrb[9].mxu1 }
 0x21c   : > { %v6156_v26 = vpop.f32.mrb[11].mxu0  ;;  %6242 = vmatpush3.xpose.msk.msra.mxu0 %vm1994_vm5, %v1481_v19  ;;  %v1547_v27 = vpop.f32.mrb[10].mxu1 }
 0x21d   : > { %6247 = vmatpush3.xpose.msk.msra.mxu1 %vm1994_vm5, %v1545_v23  ;;  %v6168_v29 = vpop.f32.mrb[11].mxu1  ;;  %6251 = vmatprep.subr.mxu0 %v6585_v12 }
 0x21e   : > { %6256 = vmatprep.subr.mxu1 %v6585_v12 }
 0x21f   : > { %6244 = vmatmul.mubr.msk.f32.vlgmr.msra.gmra.mrb[24].mxu0 %vm1994_vm5, %v1165_v28 }
 0x220   : > { %6249 = vmatmul.mubr.msk.f32.vlgmr.msra.gmra.mrb[24].mxu1 %vm1994_vm5, %v1229_v30  ;;  %6253 = vmatprep.mubr.msk.f32.mxu0 %vm6586_vm3, %v6585_v12 }
 0x221   : > { %6258 = vmatprep.mubr.msk.f32.mxu1 %vm6586_vm3, %v6585_v12 }
 0x229   : > { %v1608_v33 = vpop.f32.mrb[12].mxu0 }
 0x22a   : > { %v1609_v35 = vadd.f32 %v5528_v31, %v1608_v33  ;;  %v1672_v36 = vpop.f32.mrb[12].mxu1  ;;  %v6179_v37 = vpop.f32.mrb[13].mxu0 }
 0x22b   : > { %v1673_v39 = vadd.f32 %v5529_v32, %v1672_v36  ;;  %v1611_v40 = vpop.f32.mrb[14].mxu0  ;;  %v6191_v41 = vpop.f32.mrb[13].mxu1 }
 0x22c   : > { %v6180_v42 = vpop.f32.mrb[15].mxu0  ;;  %v1675_v43 = vpop.f32.mrb[14].mxu1  ;;  %6252 = vmatpush3.xpose.msk.msra.mxu0 %vm1994_vm5, %v1609_v35 }
 0x22d   : > { %6257 = vmatpush3.xpose.msk.msra.mxu1 %vm1994_vm5, %v1673_v39  ;;  %v6192_v45 = vpop.f32.mrb[15].mxu1  ;;  %6261 = vmatprep.subr.mxu0 %v6585_v12  ;;  %v5552_v42 = vld [vmem:[%s7505_s26 + $0x2] ss:$0 sm:$0xff] }
 0x22e   : > { %6266 = vmatprep.subr.mxu1 %v6585_v12 }
 0x22f   : > { %6254 = vmatmul.mubr.msk.f32.vlgmr.msra.gmra.mrb[26].mxu0 %vm1994_vm5, %v1293_v44 }
 0x230   : > { %6259 = vmatmul.mubr.msk.f32.vlgmr.msra.gmra.mrb[26].mxu1 %vm1994_vm5, %v1357_v46  ;;  %6263 = vmatprep.mubr.msk.f32.mxu0 %vm6586_vm3, %v6585_v12  ;;  %v5553_v46 = vld [vmem:[%s7505_s26 + $0x3] ss:$0 sm:$0xff] }
 0x231   : > { %6268 = vmatprep.mubr.msk.f32.mxu1 %vm6586_vm3, %v6585_v12 }
 0x239   : > { %v1796_v49 = vpop.f32.mrb[16].mxu0 }
 0x23a   : > { %v1860_v50 = vpop.f32.mrb[16].mxu1  ;;  %v1797_v51 = vadd.f32 %v5550_v47, %v1796_v49  ;;  %v6203_v52 = vpop.f32.mrb[17].mxu0 }
 0x23b   : > { %v1861_v53 = vadd.f32 %v5551_v48, %v1860_v50  ;;  %v6215_v54 = vpop.f32.mrb[17].mxu1  ;;  %v1799_v55 = vpop.f32.mrb[18].mxu0 }
 0x23c   : > { %v1863_v56 = vpop.f32.mrb[18].mxu1  ;;  %v6204_v57 = vpop.f32.mrb[19].mxu0  ;;  %6262 = vmatpush3.msra.mxu0 %v1797_v51 }
 0x23d   : > { %v6216_v58 = vpop.f32.mrb[19].mxu1  ;;  %6267 = vmatpush3.msra.mxu1 %v1861_v53  ;;  %6271 = vmatprep.subr.mxu0 %v6585_v12  ;;  %v6421_v56 = vld [vmem:[%s6765_s21] sm:$0xff]   ;;  %v6422_v57 = vld [vmem:[%s6765_s21 + $0x8] sm:$0xff]  }
 0x23e   : > { %6276 = vmatprep.subr.mxu1 %v6585_v12 }
 0x249   : > { %v7002_v59 = vpop.f32.mrb[20].mxu0 }
 0x24a   : > { %v7004_v60 = vpop.f32.mrb[20].mxu1  ;;  %v6227_v61 = vpop.f32.mrb[21].mxu0  ;;  %v1925_v45 = vadd.f32 %v5552_v42, %v7002_v59  ;;  %v6423_v59 = vld [vmem:[%s6765_s21 + $0x10] sm:$0xff]   ;;  %v2903_v42 = vld [vmem:[%s6787_s20 + $0x40] sm:$0xff] }
 0x24b   : > { %v6239_v62 = vpop.f32.mrb[21].mxu1  ;;  %v1927_v63 = vpop.f32.mrb[22].mxu0  ;;  %v1989_v50 = vadd.f32 %v5553_v46, %v7004_v60 }
 0x24c   : > { %v1991_v0 = vpop.f32.mrb[22].mxu1  ;;  %v6228_v1 = vpop.f32.mrb[23].mxu0  ;;  %v6424_v63 = vld [vmem:[%s6765_s21 + $0x18] sm:$0xff]   ;;  %s7510_s21 = sld [smem:[#allocation17_spill]] (!%p5800_p5) }
 0x24d   : > { %v6240_v2 = vpop.f32.mrb[23].mxu1 }
 0x2f2   : > { %v2067_v3 = vpop.f32.mrb[24].mxu0 }
 0x2f3   : > { %v2299_v4 = vmul.f32 0.25, %v2067_v3  ;;  %v2143_v5 = vpop.f32.mrb[24].mxu1  ;;  %v6245_v6 = vpop.f32.mrb[25].mxu0 }
 0x2f4   : > { %v6250_v7 = vpop.f32.mrb[25].mxu1  ;;  %v2300_v8 = vmul.f32 0.25, %v2143_v5 }
 0x2f5   : > { %v2304_v9 = vsel %vm2303_vm6, %v2299_v4, -inf }
 0x2f6   : > { %2305 = vmax.xlane.f32.xlu0 %v2304_v9  ;;  %v2307_v10 = vsel %vm2303_vm6, %v2300_v8, -inf }
 0x2fa   : > { %2308 = vmax.xlane.f32.xlu0 %v2307_v10 }
 0x302   : > { %v2219_v11 = vpop.f32.mrb[26].mxu0 }
 0x303   : > { %v2301_v13 = vmul.f32 0.25, %v2219_v11  ;;  %v2295_v14 = vpop.f32.mrb[26].mxu1  ;;  %v6255_v15 = vpop.f32.mrb[27].mxu0 }
 0x304   : > { %v6260_v16 = vpop.f32.mrb[27].mxu1  ;;  %v2302_v17 = vmul.f32 0.25, %v2295_v14 }
 0x305   : > { %v2310_v18 = vsel %vm2303_vm6, %v2301_v13, -inf }
 0x306   : > { %2311 = vmax.xlane.f32.xlu1 %v2310_v18  ;;  %v2313_v19 = vsel %vm2303_vm6, %v2302_v17, -inf }
 0x30a   : > { %2314 = vmax.xlane.f32.xlu1 %v2313_v19 }
 0x383   : > { %v2306_v20 = vpop.xlane.xlu0 %2305 }
 0x384   : > { %v2316_v21 = vsub.f32 %v2299_v4, %v2306_v20 }
 0x386   : > { %v2320_v22 = vmul.f32 1.442695, %v2316_v21 }
 0x387   : > { %v2309_v23 = vpop.xlane.xlu0 %2308 }
 0x388   : > { %6553 = vpow2.f32 %v2320_v22  ;;  %v2317_v24 = vsub.f32 %v2300_v8, %v2309_v23 }
 0x38a   : > { %v2322_v25 = vmul.f32 1.442695, %v2317_v24 }
 0x38c   : > { %6555 = vpow2.f32 %v2322_v25 }
 0x392   : > { %v6554_v26 = vpop.eup %6553 }
 0x393   : > { %v2312_v27 = vpop.xlane.xlu1 %2311  ;;  %v2328_v28 = vsel %vm2303_vm6, %v6554_v26, 0.0 }
 0x394   : > { %v2318_v29 = vsub.f32 %v2301_v13, %v2312_v27  ;;  %2329 = vadd.xlane.f32.xlu0 %v2328_v28  ;;  %v5594_v27 = vld [vmem:[%s7506_s22] ss:$0 sm:$0xff] }
 0x396   : > { %v6556_v30 = vpop.eup %6555  ;;  %v2324_v31 = vmul.f32 1.442695, %v2318_v29 }
 0x397   : > { %v2315_v32 = vpop.xlane.xlu1 %2314  ;;  %v2331_v33 = vsel %vm2303_vm6, %v6556_v30, 0.0 }
 0x398   : > { %6557 = vpow2.f32 %v2324_v31  ;;  %v2319_v34 = vsub.f32 %v2302_v17, %v2315_v32  ;;  %2332 = vadd.xlane.f32.xlu1 %v2331_v33  ;;  %v6573_v33 = vld [vmem:[#allocation2] sm:$0xff] }
 0x39a   : > { %v2326_v35 = vmul.f32 1.442695, %v2319_v34 }
 0x39c   : > { %6559 = vpow2.f32 %v2326_v35 }
 0x3a2   : > { %v6558_v36 = vpop.eup %6557 }
 0x3a3   : > { %v2334_v37 = vsel %vm2303_vm6, %v6558_v36, 0.0 }
 0x3a4   : > { %2335 = vadd.xlane.f32.xlu0 %v2334_v37 }
 0x3a6   : > { %v6560_v38 = vpop.eup %6559 }
 0x3a7   : > { %v2337_v39 = vsel %vm2303_vm6, %v6560_v38, 0.0 }
 0x3a8   : > { %2338 = vadd.xlane.f32.xlu1 %v2337_v39 }
 0x421   : > { %v2330_v40 = vpop.xlane.xlu0 %2329 }
 0x422   : > { %6561 = vrcp.f32 %v2330_v40 }
 0x425   : > { %v2333_v41 = vpop.xlane.xlu1 %2332 }
 0x426   : > { %6563 = vrcp.f32 %v2333_v41  ;;  %v2895_v41 = vld [vmem:[%s6787_s20] sm:$0xff] }
 0x427   : > { %v5597_v46 = vcombine.low %v2895_v41, %v2903_v42 }
 0x42c   : > { %v6562_v43 = vpop.eup %6561 }
 0x42d   : > { %v2341_v44 = vmul.f32 %v6562_v43, %v6554_v26  ;;  %v2896_v43 = vld [vmem:[%s6787_s20 + $0x8] sm:$0xff] }
 0x42f   : > { %6264 = vmatmul.mubr.msk.f32.vlgmr.msra.gmra.mrb[28].mxu0 %vm2303_vm6, %v2341_v44  ;;  %v5598_v44 = vcombine.high %v2895_v41, %v2903_v42  ;;  %v2945_v42 = vld [vmem:[%s6787_s20 + $0x190] sm:$0xff] }
 0x430   : > { %v6564_v47 = vpop.eup %6563  ;;  %6272 = vmatpush3.msra.mxu0 %v1925_v45  ;;  %6273 = vmatprep.mubr.msk.f32.mxu0 %vm6586_vm3, %v6585_v12  ;;  %v2904_v45 = vld [vmem:[%s6787_s20 + $0x48] sm:$0xff] }
 0x431   : > { %v2343_v48 = vmul.f32 %v6564_v47, %v6556_v30  ;;  %v2336_v49 = vpop.xlane.xlu0 %2335  ;;  %6281 = vmatprep.subr.bf16.mxu0 %v6585_v12  ;;  %v5599_v47 = vcombine.low %v2896_v43, %v2904_v45 }
 0x432   : > { %6565 = vrcp.f32 %v2336_v49  ;;  %v2911_v49 = vld [vmem:[%s6787_s20 + $0x80] sm:$0xff] }
 0x433   : > { %6269 = vmatmul.mubr.msk.f32.vlgmr.msra.gmra.mrb[28].mxu1 %vm2303_vm6, %v2343_v48  ;;  %v5600_v48 = vcombine.high %v2896_v43, %v2904_v45  ;;  %v2953_v43 = vld [vmem:[%s6787_s20 + $0x1d0] sm:$0xff]  ;;  %v2954_v45 = vld [vmem:[%s6787_s20 + $0x1d8] sm:$0xff] }
 0x434   : > { %6277 = vmatpush3.msra.mxu1 %v1989_v50  ;;  %6278 = vmatprep.mubr.msk.f32.mxu1 %vm6586_vm3, %v6585_v12  ;;  %v2919_v50 = vld [vmem:[%s6787_s20 + $0xc0] sm:$0xff] }
 0x435   : > { %v2339_v51 = vpop.xlane.xlu1 %2338  ;;  %6287 = vmatprep.subr.bf16.mxu1 %v6585_v12 }
 0x436   : > { %6567 = vrcp.f32 %v2339_v51  ;;  %v2912_v51 = vld [vmem:[%s6787_s20 + $0x88] sm:$0xff] }
 0x43c   : > { %v6566_v52 = vpop.eup %6565 }
 0x43d   : > { %v2345_v53 = vmul.f32 %v6566_v52, %v6558_v36  ;;  %v5614_v52 = vcombine.high %v2911_v49, %v2919_v50 }
 0x43f   : > { %6274 = vmatmul.mubr.msk.f32.vlgmr.msra.gmra.mrb[30].mxu0 %vm2303_vm6, %v2345_v53  ;;  %v2920_v53 = vld [vmem:[%s6787_s20 + $0xc8] sm:$0xff] }
 0x440   : > { %v6568_v54 = vpop.eup %6567  ;;  %6283 = vmatprep.mubr.msk.bf16.mxu0 %vm6586_vm3, %v6585_v12  ;;  %6282 = vmatpush3.bf16.msra.mxu0 %v6421_v56  ;;  %v5616_v56 = vcombine.high %v2912_v51, %v2920_v53 }
 0x441   : > { %v2347_v55 = vmul.f32 %v6568_v54, %v6560_v38  ;;  %6293 = vmatprep.subr.bf16.mxu0 %v6585_v12  ;;  %v5613_v54 = vcombine.low %v2911_v49, %v2919_v50  ;;  %v2899_v50 = vld [vmem:[%s6787_s20 + $0x20] sm:$0xff] }
 0x443   : > { %6279 = vmatmul.mubr.msk.f32.vlgmr.msra.gmra.mrb[30].mxu1 %vm2303_vm6, %v2347_v55  ;;  %v5615_v55 = vcombine.low %v2912_v51, %v2920_v53  ;;  %v2907_v51 = vld [vmem:[%s6787_s20 + $0x60] sm:$0xff]  ;;  %v2908_v53 = vld [vmem:[%s6787_s20 + $0x68] sm:$0xff] }
 0x444   : > { %6289 = vmatprep.mubr.msk.bf16.mxu1 %vm6586_vm3, %v6585_v12  ;;  %6288 = vmatpush3.bf16.msra.mxu1 %v6422_v57  ;;  %v2927_v57 = vld [vmem:[%s6787_s20 + $0x100] sm:$0xff] }
 0x445   : > { %6299 = vmatprep.subr.bf16.mxu1 %v6585_v12 }
 0x502   : > { %v2417_v58 = vpop.f32.mrb[28].mxu0 }
 0x503   : > { %v2640_v60 = vpack.c.bf16 %v2417_v58, %v2417_v58  ;;  %v6265_v61 = vpop.f32.mrb[29].mxu0  ;;  %v2935_v58 = vld [vmem:[%s6787_s20 + $0x140] sm:$0xff] }
 0x504   : > { %v2936_v61 = vld [vmem:[%s6787_s20 + $0x148] sm:$0xff] }
 0x505   : > { %6284 = vmatmul.mubr.msk.bf16.vlgmr.msra.gmra.mrb[32].mxu0 %vm1994_vm5, %v2640_v60  ;;  %v5630_v60 = vcombine.high %v2927_v57, %v2935_v58 }
 0x506   : > { %v2490_v62 = vpop.f32.mrb[28].mxu1  ;;  %6294 = vmatpush3.bf16.msra.mxu0 %v6423_v59  ;;  %6295 = vmatprep.mubr.msk.bf16.mxu0 %vm6586_vm3, %v6585_v12  ;;  %v2928_v59 = vld [vmem:[%s6787_s20 + $0x108] sm:$0xff] }
 0x507   : > { %v2641_v0 = vpack.c.bf16 %v2490_v62, %v2490_v62  ;;  %v6270_v1 = vpop.f32.mrb[29].mxu1  ;;  %3366 = vmatprep.subr.bf16.mxu0 %v5598_v44  ;;  %v5629_v62 = vcombine.low %v2927_v57, %v2935_v58  ;;  %v2946_v44 = vld [vmem:[%s6787_s20 + $0x198] sm:$0xff]  ;;  %v2915_v58 = vld [vmem:[%s6787_s20 + $0xa0] sm:$0xff] }
 0x508   : > { %v2943_v1 = vld [vmem:[%s6787_s20 + $0x180] sm:$0xff]  ;;  %v5652_v49 = vcombine.high %v2946_v44, %v2954_v45 }
 0x509   : > { %6290 = vmatmul.mubr.msk.bf16.vlgmr.msra.gmra.mrb[32].mxu1 %vm1994_vm5, %v2641_v0  ;;  %v5632_v0 = vcombine.high %v2928_v59, %v2936_v61 }
 0x50a   : > { %6300 = vmatpush3.bf16.msra.mxu1 %v6424_v63  ;;  %6301 = vmatprep.mubr.msk.bf16.mxu1 %vm6586_vm3, %v6585_v12  ;;  %v5631_v63 = vcombine.low %v2928_v59, %v2936_v61  ;;  %v2923_v59 = vld [vmem:[%s6787_s20 + $0xe0] sm:$0xff]  ;;  %v2924_v61 = vld [vmem:[%s6787_s20 + $0xe8] sm:$0xff] }
 0x50b   : > { %3407 = vmatprep.subr.bf16.mxu1 %v5600_v48  ;;  %v5650_v48 = vcombine.high %v2945_v42, %v2953_v43 }
 0x512   : > { %v2563_v2 = vpop.f32.mrb[30].mxu0 }
 0x513   : > { %v2642_v3 = vpack.c.bf16 %v2563_v2, %v2563_v2  ;;  %v6275_v4 = vpop.f32.mrb[31].mxu0  ;;  %v2951_v2 = vld [vmem:[%s6787_s20 + $0x1c0] sm:$0xff] }
 0x514   : > { %v5646_v4 = vcombine.high %v2943_v1, %v2951_v2 }
 0x515   : > { %6296 = vmatmul.mubr.msk.bf16.vlgmr.msra.gmra.mrb[36].mxu0 %vm1994_vm5, %v2642_v3  ;;  %v2944_v3 = vld [vmem:[%s6787_s20 + $0x188] sm:$0xff] }
 0x516   : > { %v2636_v5 = vpop.f32.mrb[30].mxu1  ;;  %3367 = vmatpush1.bf16.msra.mxu0 %v5597_v46 }
 0x517   : > { %v2643_v6 = vpack.c.bf16 %v2636_v5, %v2636_v5  ;;  %v6280_v7 = vpop.f32.mrb[31].mxu1  ;;  %3368 = vmatprep.subr.bf16.mxu0 %v5614_v52  ;;  %v2952_v5 = vld [vmem:[%s6787_s20 + $0x1c8] sm:$0xff] }
 0x518   : > { %v5647_v7 = vcombine.low %v2944_v3, %v2952_v5  ;;  %v2900_v52 = vld [vmem:[%s6787_s20 + $0x28] sm:$0xff] }
 0x519   : > { %6302 = vmatmul.mubr.msk.bf16.vlgmr.msra.gmra.mrb[36].mxu1 %vm1994_vm5, %v2643_v6  ;;  %v5645_v6 = vcombine.low %v2943_v1, %v2951_v2  ;;  %v5608_v57 = vcombine.high %v2900_v52, %v2908_v53  ;;  %v2931_v2 = vld [vmem:[%s6787_s20 + $0x120] sm:$0xff] }
 0x51a   : > { %3408 = vmatpush1.bf16.msra.mxu1 %v5599_v47  ;;  %3369 = vmatpush1.bf16.msra.mxu0 %v5613_v54  ;;  %v5649_v54 = vcombine.low %v2945_v42, %v2953_v43 }
 0x51b   : > { %3409 = vmatprep.subr.bf16.mxu1 %v5616_v56  ;;  %3370 = vmatprep.subr.bf16.mxu0 %v5630_v60  ;;  %v5606_v56 = vcombine.high %v2899_v50, %v2907_v51  ;;  %v2916_v60 = vld [vmem:[%s6787_s20 + $0xa8] sm:$0xff] }
 0x51c   : > { %v5624_v1 = vcombine.high %v2916_v60, %v2924_v61 }
 0x51e   : > { %3410 = vmatpush1.bf16.msra.mxu1 %v5615_v55  ;;  %3371 = vmatpush1.bf16.msra.mxu0 %v5629_v62  ;;  %v5651_v55 = vcombine.low %v2946_v44, %v2954_v45  ;;  %v5605_v62 = vcombine.low %v2899_v50, %v2907_v51  ;;  %v2949_v45 = vld [vmem:[%s6787_s20 + $0x1b0] sm:$0xff] }
 0x51f   : > { %3411 = vmatprep.subr.bf16.mxu1 %v5632_v0  ;;  %3372 = vmatprep.subr.bf16.mxu0 %v5646_v4  ;;  %v5622_v0 = vcombine.high %v2915_v58, %v2923_v59  ;;  %v2932_v4 = vld [vmem:[%s6787_s20 + $0x128] sm:$0xff] }
 0x522   : > { %3412 = vmatpush1.bf16.msra.mxu1 %v5631_v63  ;;  %3373 = vmatpush1.bf16.msra.mxu0 %v5645_v6  ;;  %v5607_v63 = vcombine.low %v2900_v52, %v2908_v53  ;;  %v5621_v6 = vcombine.low %v2915_v58, %v2923_v59  ;;  %v6429_v58 = vld [vmem:[%s6799_s7 + $0x48] sm:$0xff]  }
 0x523   : > { %v6430_v59 = vld [vmem:[%s6799_s7 + $0xc8] sm:$0xff]  }
 0x5d8   : > { %v2695_v8 = vpop.f32.mrb[32].mxu0 }
 0x5d9   : > { %v6285_v9 = vpop.f32.mrb[33].mxu0  ;;  %v2848_v14 = vsel %vm1126_vm4, %v2695_v8, 0.0  ;;  %v5648_v8 = vcombine.high %v2944_v3, %v2952_v5  ;;  %v2939_v3 = vld [vmem:[%s6787_s20 + $0x160] sm:$0xff]  ;;  %v2940_v5 = vld [vmem:[%s6787_s20 + $0x168] sm:$0xff] }
 0x5da   : > { %v2698_v10 = vpop.f32.mrb[34].mxu0  ;;  %v2897_v9 = vld [vmem:[%s6787_s20 + $0x10] sm:$0xff] }
 0x5db   : > { %v6286_v11 = vpop.f32.mrb[35].mxu0  ;;  %3413 = vmatprep.subr.bf16.mxu1 %v5648_v8  ;;  %v2905_v10 = vld [vmem:[%s6787_s20 + $0x50] sm:$0xff]  ;;  %v5638_v8 = vcombine.high %v2931_v2, %v2939_v3 }
 0x5dc   : > { %v2744_v13 = vpop.f32.mrb[32].mxu1  ;;  %v2898_v11 = vld [vmem:[%s6787_s20 + $0x18] sm:$0xff]  ;;  %3414 = vmatpush1.bf16.msra.mxu1 %v5647_v7  ;;  %v5623_v7 = vcombine.low %v2916_v60, %v2924_v61  ;;  %v6431_v60 = vld [vmem:[%s6799_s7 + $0x8] sm:$0xff]  }
 0x5dd   : > { %v2849_v12 = vsel %vm1126_vm4, %v2744_v13, 0.0  ;;  %v6291_v15 = vpop.f32.mrb[33].mxu1  ;;  %v5601_v13 = vcombine.low %v2897_v9, %v2905_v10  ;;  %v6432_v61 = vld [vmem:[%s6799_s7 + $0x88] sm:$0xff]  }
 0x5de   : > { %v2850_v16 = vadd.f32 %v2849_v12, %v2848_v14  ;;  %v2747_v17 = vpop.f32.mrb[34].mxu1  ;;  %v5602_v14 = vcombine.high %v2897_v9, %v2905_v10  ;;  %v2906_v12 = vld [vmem:[%s6787_s20 + $0x58] sm:$0xff]  ;;  %v6587_v15 = vmov 0   ;;  %v5640_v9 = vcombine.high %v2932_v4, %v2940_v5  ;;  %v2947_v10 = vld [vmem:[%s6787_s20 + $0x1a0] sm:$0xff] }
 0x5df   : > { %v6292_v18 = vpop.f32.mrb[35].mxu1  ;;  %3398 = vmatprep.mubr.bf16.mxu0 %v6587_v15  ;;  %3439 = vmatprep.mubr.bf16.mxu1 %v6587_v15  ;;  %v5604_v17 = vcombine.high %v2898_v11, %v2906_v12 }
 0x5e0   : > { %3448 = vmatprep.subr.bf16.mxu0 %v5602_v14  ;;  %v2956_v14 = vld [vmem:[%s6787_s20 + $0x1e8] sm:$0xff] }
 0x5e1   : > { %3489 = vmatprep.subr.bf16.mxu1 %v5604_v17 }
 0x5e8   : > { %v2793_v19 = vpop.f32.mrb[36].mxu0 }
 0x5e9   : > { %v2851_v20 = vsel %vm1126_vm4, %v2793_v19, 0.0  ;;  %v6297_v21 = vpop.f32.mrb[37].mxu0 }
 0x5ea   : > { %v2852_v22 = vadd.f32 %v2851_v20, %v2850_v16  ;;  %v2796_v23 = vpop.f32.mrb[38].mxu0  ;;  %v5603_v16 = vcombine.low %v2898_v11, %v2906_v12  ;;  %v2955_v11 = vld [vmem:[%s6787_s20 + $0x1e0] sm:$0xff]  ;;  %v5637_v12 = vcombine.low %v2931_v2, %v2939_v3  ;;  %v6438_v2 = vld [vmem:[%s6799_s7 + $0xd8] sm:$0xff]  }
 0x5eb   : > { %v6298_v24 = vpop.f32.mrb[39].mxu0  ;;  %v5654_v17 = vcombine.high %v2947_v10, %v2955_v11  ;;  %v6439_v3 = vld [vmem:[%s6799_s7 + $0x18] sm:$0xff]  }
 0x5ec   : > { %v2842_v25 = vpop.f32.mrb[36].mxu1  ;;  %v5596_v24 = vld [vmem:[%s7508_s0] ss:$0 sm:$0xff] }
 0x5ed   : > { %v2853_v26 = vsel %vm1126_vm4, %v2842_v25, 0.0  ;;  %v6303_v28 = vpop.f32.mrb[37].mxu1 }
 0x5ee   : > { %v2854_v29 = vadd.f32 %v2853_v26, %v2852_v22  ;;  %v2845_v30 = vpop.f32.mrb[38].mxu1  ;;  %v5595_v22 = vld [vmem:[%s7507_s2] ss:$0 sm:$0xff]  ;;  %v2913_v26 = vld [vmem:[%s6787_s20 + $0x90] sm:$0xff]  ;;  %v2914_v28 = vld [vmem:[%s6787_s20 + $0x98] sm:$0xff] }
 0x5ef   : > { %v6304_v31 = vpop.f32.mrb[39].mxu1 }
 0x5f0   : > { %v2862_v32 = vadd.f32 %v5594_v27, %v2854_v29  ;;  %v2921_v27 = vld [vmem:[%s6787_s20 + $0xd0] sm:$0xff]  ;;  %v2922_v29 = vld [vmem:[%s6787_s20 + $0xd8] sm:$0xff] }
 0x5f2   : > { %v2863_v34 = vadd.f32 %v6573_v33, %v2862_v32  ;;  %v5618_v32 = vcombine.high %v2913_v26, %v2921_v27  ;;  %v5620_v33 = vcombine.high %v2914_v28, %v2922_v29 }
 0x5f4   : > { %v2866_v35 = vsel %vm1126_vm4, %v2863_v34, 0.0 }
 0x5f5   : > { %2867 = vadd.xlane.f32.xlu0 %v2866_v35  ;;  %v2937_v35 = vld [vmem:[%s6787_s20 + $0x150] sm:$0xff] }
 0x682   : > { %v2868_v36 = vpop.xlane.xlu0 %2867 }
 0x683   : > { %v2870_v37 = vmul.f32 0.015625, %v2868_v36  ;;  %v2930_v36 = vld [vmem:[%s6787_s20 + $0x118] sm:$0xff] }
 0x685   : > { %v7056_v38 = vsub.f32 %v2863_v34, %v2870_v37  ;;  %v2929_v34 = vld [vmem:[%s6787_s20 + $0x110] sm:$0xff]  ;;  %v2938_v37 = vld [vmem:[%s6787_s20 + $0x158] sm:$0xff] }
 0x686   : > { %v5636_v41 = vcombine.high %v2930_v36, %v2938_v37  ;;  %v5633_v46 = vcombine.low %v2929_v34, %v2937_v35  ;;  %v5635_v47 = vcombine.low %v2930_v36, %v2938_v37  ;;  %v2933_v37 = vld [vmem:[%s6787_s20 + $0x130] sm:$0xff] }
 0x687   : > { %v2872_v39 = vmul.f32 %v7056_v38, %v7056_v38 }
 0x689   : > { %v2873_v40 = vsel %vm1126_vm4, %v2872_v39, 0.0  ;;  %v5619_v39 = vcombine.low %v2914_v28, %v2922_v29  ;;  %v2925_v28 = vld [vmem:[%s6787_s20 + $0xf0] sm:$0xff]  ;;  %v2918_v29 = vld [vmem:[%s6787_s20 + $0xb8] sm:$0xff] }
 0x68a   : > { %2874 = vadd.xlane.f32.xlu1 %v2873_v40  ;;  %v5634_v40 = vcombine.high %v2929_v34, %v2937_v35 }
 0x717   : > { %v2875_v18 = vpop.xlane.xlu1 %2874 }
 0x718   : > { %v2876_v19 = vmul.f32 0.015625, %v2875_v18 }
 0x71a   : > { %v2877_v20 = vadd.f32 1e-05, %v2876_v19  ;;  %v2901_v19 = vld [vmem:[%s6787_s20 + $0x30] sm:$0xff] }
 0x71c   : > { %6569 = vrsqrt.f32 %v2877_v20  ;;  %v2909_v20 = vld [vmem:[%s6787_s20 + $0x70] sm:$0xff] }
 0x726   : > { %v6570_v21 = vpop.eup %6569 }
 0x727   : > { %v2879_v23 = vmul.f32 %v6570_v21, %v7056_v38  ;;  %v5617_v38 = vcombine.low %v2913_v26, %v2921_v27  ;;  %v2902_v21 = vld [vmem:[%s6787_s20 + $0x38] sm:$0xff]  ;;  %v2917_v27 = vld [vmem:[%s6787_s20 + $0xb0] sm:$0xff] }
 0x728   : > { %v5626_v35 = vcombine.high %v2917_v27, %v2925_v28 }
 0x729   : > { %v2886_v25 = vmul.f32 %v5595_v22, %v2879_v23  ;;  %v2910_v22 = vld [vmem:[%s6787_s20 + $0x78] sm:$0xff]  ;;  %v5653_v23 = vcombine.low %v2947_v10, %v2955_v11  ;;  %v6446_v10 = vld [vmem:[%s6799_s7 + $0xe8] sm:$0xff]  }
 0x72a   : > { %v5612_v26 = vcombine.high %v2902_v21, %v2910_v22  ;;  %v5611_v34 = vcombine.low %v2902_v21, %v2910_v22  ;;  %v6447_v11 = vld [vmem:[%s6799_s7 + $0x28] sm:$0xff]   ;;  %v6456_v21 = vld [vmem:[%s6799_s7 + $0xb8] sm:$0xff]   ;;  %v6457_v22 = vld [vmem:[%s6799_s7 + $0x140] sm:$0xff]  }
 0x72b   : > { %v7098_v30 = vadd.f32 %v5596_v24, %v2886_v25  ;;  %v5610_v25 = vcombine.high %v2901_v19, %v2909_v20 }
 0x72d   : > { %v7102_v31 = vpack.c.bf16 %v7098_v30, %v7098_v30 }
 0x72f   : > { %5661 = vmatmul.mubr.msk.bf16.vlgmr.msra.gmra.mrb[40].mxu0 %vm1126_vm4, %v7102_v31  ;;  %5662 = vmatmul.mubr.msk.bf16.vlgmr.msra.gmra.mrb[40].mxu1 %vm1126_vm4, %v7102_v31 }
 0x730   : > { %3449 = vmatpush1.bf16.msra.mxu0 %v5601_v13  ;;  %3490 = vmatpush1.bf16.msra.mxu1 %v5603_v16  ;;  %v2948_v13 = vld [vmem:[%s6787_s20 + $0x1a8] sm:$0xff]  ;;  %v5639_v16 = vcombine.low %v2932_v4, %v2940_v5  ;;  %v6440_v4 = vld [vmem:[%s6799_s7 + $0x98] sm:$0xff]   ;;  %v6441_v5 = vld [vmem:[%s6799_s7 + $0x60] sm:$0xff]  }
 0x731   : > { %3450 = vmatprep.subr.bf16.mxu0 %v5618_v32  ;;  %3491 = vmatprep.subr.bf16.mxu1 %v5620_v33  ;;  %v5656_v18 = vcombine.high %v2948_v13, %v2956_v14  ;;  %v5655_v24 = vcombine.low %v2948_v13, %v2956_v14  ;;  %v2926_v32 = vld [vmem:[%s6787_s20 + $0xf8] sm:$0xff]  ;;  %v5609_v33 = vcombine.low %v2901_v19, %v2909_v20  ;;  %v6448_v13 = vld [vmem:[%s6799_s7 + $0xa8] sm:$0xff]   ;;  %v6449_v14 = vld [vmem:[%s6799_s7 + $0x70] sm:$0xff]  }
 0x732   : > { %3480 = vmatprep.mubr.bf16.mxu0 %v6587_v15  ;;  %3521 = vmatprep.mubr.bf16.mxu1 %v6587_v15  ;;  %v5628_v36 = vcombine.high %v2918_v29, %v2926_v32  ;;  %v5627_v42 = vcombine.low %v2918_v29, %v2926_v32  ;;  %v6454_v19 = vld [vmem:[%s6799_s7 + $0xf8] sm:$0xff]  }
 0x733   : > { %v6455_v20 = vld [vmem:[%s6799_s7 + $0x38] sm:$0xff]  }
 0x734   : > { %3451 = vmatpush1.bf16.msra.mxu0 %v5617_v38  ;;  %3492 = vmatpush1.bf16.msra.mxu1 %v5619_v39  ;;  %v2941_v38 = vld [vmem:[%s6787_s20 + $0x170] sm:$0xff]  ;;  %v2934_v39 = vld [vmem:[%s6787_s20 + $0x138] sm:$0xff] }
 0x735   : > { %3452 = vmatprep.subr.bf16.mxu0 %v5634_v40  ;;  %3493 = vmatprep.subr.bf16.mxu1 %v5636_v41  ;;  %v2942_v40 = vld [vmem:[%s6787_s20 + $0x178] sm:$0xff]  ;;  %v5625_v41 = vcombine.low %v2917_v27, %v2925_v28  ;;  %v5642_v43 = vcombine.high %v2933_v37, %v2941_v38  ;;  %v7204_v27 = vld [vmem:[%s6793_s19 + $0x8] sm:$0xff] }
 0x736   : > { %v5644_v44 = vcombine.high %v2934_v39, %v2942_v40  ;;  %v5643_v50 = vcombine.low %v2934_v39, %v2942_v40 }
 0x738   : > { %3453 = vmatpush1.bf16.msra.mxu0 %v5633_v46  ;;  %3494 = vmatpush1.bf16.msra.mxu1 %v5635_v47  ;;  %v2957_v46 = vld [vmem:[%s6787_s20 + $0x1f0] sm:$0xff]  ;;  %v2950_v47 = vld [vmem:[%s6787_s20 + $0x1b8] sm:$0xff] }
 0x739   : > { %3454 = vmatprep.subr.bf16.mxu0 %v5650_v48  ;;  %3495 = vmatprep.subr.bf16.mxu1 %v5652_v49  ;;  %v2958_v48 = vld [vmem:[%s6787_s20 + $0x1f8] sm:$0xff]  ;;  %v5641_v49 = vcombine.low %v2933_v37, %v2941_v38  ;;  %v5658_v51 = vcombine.high %v2949_v45, %v2957_v46  ;;  %v5657_v53 = vcombine.low %v2949_v45, %v2957_v46  ;;  %s7513_s20 = sld [smem:[#allocation20_spill]] (!%p5800_p5) }
 0x73a   : > { %v5660_v52 = vcombine.high %v2950_v47, %v2958_v48 }
 0x73c   : > { %3455 = vmatpush1.bf16.msra.mxu0 %v5649_v54  ;;  %3496 = vmatpush1.bf16.msra.mxu1 %v5651_v55  ;;  %v5659_v54 = vcombine.low %v2950_v47, %v2958_v48  ;;  %v6426_v55 = vld [vmem:[%s6799_s7 + $0xc0] sm:$0xff]  }
 0x73d   : > { %3530 = vmatprep.subr.bf16.mxu0 %v5606_v56  ;;  %3571 = vmatprep.subr.bf16.mxu1 %v5608_v57  ;;  %v6427_v56 = vld [vmem:[%s6799_s7] sm:$0xff]  }
 0x73e   : > { %v6428_v57 = vld [vmem:[%s6799_s7 + $0x80] sm:$0xff]  }
 0x73f   : > { %5663 = vmatmul.mubr.msk.bf16.vlgmr.msra.gmra.mrb[44].mxu0 %vm1126_vm4, %v7102_v31  ;;  %5664 = vmatmul.mubr.msk.bf16.vlgmr.msra.gmra.mrb[44].mxu1 %vm1126_vm4, %v7102_v31 }
 0x740   : > { %3531 = vmatpush1.bf16.msra.mxu0 %v5605_v62  ;;  %3572 = vmatpush1.bf16.msra.mxu1 %v5607_v63  ;;  %v6433_v62 = vld [vmem:[%s6799_s7 + $0x50] sm:$0xff]  }
 0x741   : > { %3532 = vmatprep.subr.bf16.mxu0 %v5622_v0  ;;  %3573 = vmatprep.subr.bf16.mxu1 %v5624_v1  ;;  %v6434_v63 = vld [vmem:[%s6799_s7 + $0xd0] sm:$0xff]  }
 0x742   : > { %3562 = vmatprep.mubr.bf16.mxu0 %v6587_v15  ;;  %3603 = vmatprep.mubr.bf16.mxu1 %v6587_v15  ;;  %v6435_v0 = vld [vmem:[%s6799_s7 + $0x10] sm:$0xff]  }
 0x743   : > { %v6436_v1 = vld [vmem:[%s6799_s7 + $0x90] sm:$0xff]  }
 0x744   : > { %3533 = vmatpush1.bf16.msra.mxu0 %v5621_v6  ;;  %3574 = vmatpush1.bf16.msra.mxu1 %v5623_v7  ;;  %v6442_v6 = vld [vmem:[%s6799_s7 + $0xe0] sm:$0xff]  }
 0x745   : > { %3534 = vmatprep.subr.bf16.mxu0 %v5638_v8  ;;  %3575 = vmatprep.subr.bf16.mxu1 %v5640_v9  ;;  %v6443_v7 = vld [vmem:[%s6799_s7 + $0x20] sm:$0xff]   ;;  %v6445_v9 = vld [vmem:[%s6799_s7 + $0x68] sm:$0xff]  }
 0x746   : > { %v6444_v8 = vld [vmem:[%s6799_s7 + $0xa0] sm:$0xff]  }
 0x748   : > { %3535 = vmatpush1.bf16.msra.mxu0 %v5637_v12  ;;  %3576 = vmatpush1.bf16.msra.mxu1 %v5639_v16  ;;  %v6450_v12 = vld [vmem:[%s6799_s7 + $0xf0] sm:$0xff]  }
 0x749   : > { %3536 = vmatprep.subr.bf16.mxu0 %v5654_v17  ;;  %3577 = vmatprep.subr.bf16.mxu1 %v5656_v18  ;;  %v6451_v16 = vld [vmem:[%s6799_s7 + $0x30] sm:$0xff]   ;;  %v6453_v18 = vld [vmem:[%s6799_s7 + $0x78] sm:$0xff]  }
 0x74a   : > { %v6452_v17 = vld [vmem:[%s6799_s7 + $0xb0] sm:$0xff]  }
 0x74c   : > { %3537 = vmatpush1.bf16.msra.mxu0 %v5653_v23  ;;  %3578 = vmatpush1.bf16.msra.mxu1 %v5655_v24  ;;  %v6458_v23 = vld [vmem:[%s6799_s7 + $0x1c0] sm:$0xff]   ;;  %v2963_v24 = vlaneseq }
 0x74d   : > { %3612 = vmatprep.subr.bf16.mxu0 %v5610_v25  ;;  %3653 = vmatprep.subr.bf16.mxu1 %v5612_v26 }
 0x74e   : > { %v7200_v25 = vshrl.u32 %v2963_v24, 7  ;;  %v6474_v24 = vld [vmem:[%s6799_s7 + $0x1e0] sm:$0xff]  }
 0x74f   : > { %5665 = vmatmul.mubr.msk.bf16.vlgmr.msra.gmra.mrb[48].mxu0 %vm1126_vm4, %v7102_v31  ;;  %5666 = vmatmul.mubr.msk.bf16.vlgmr.msra.gmra.mrb[48].mxu1 %vm1126_vm4, %v7102_v31 }
 0x750   : > { %3613 = vmatpush1.bf16.msra.mxu0 %v5609_v33  ;;  %3654 = vmatpush1.bf16.msra.mxu1 %v5611_v34  ;;  %v2989_v26 = vsub.s32 6, %v7200_v25  ;;  %v2965_v29 = vsub.s32 0, %v7200_v25  ;;  %v2973_v32 = vsub.s32 2, %v7200_v25  ;;  %v7214_v33 = vld [vmem:[%s6793_s19] sm:$0xff]  ;;  %v2969_v34 = vsub.s32 1, %v7200_v25 }
 0x751   : > { %3614 = vmatprep.subr.bf16.mxu0 %v5626_v35  ;;  %3655 = vmatprep.subr.bf16.mxu1 %v5628_v36  ;;  %v2977_v35 = vsub.s32 3, %v7200_v25 }
 0x752   : > { %3644 = vmatprep.mubr.bf16.mxu0 %v6587_v15  ;;  %3685 = vmatprep.mubr.bf16.mxu1 %v6587_v15  ;;  %v6425_v15 = vld [vmem:[%s6799_s7 + $0x40] sm:$0xff]   ;;  %v7209_v28 = vrot.slane %v7204_v27, %v2989_v26  ;;  %v2966_v36 = vrot.slane %v7214_v33, %v2965_v29  ;;  %v2974_v37 = vrot.slane %v7214_v33, %v2973_v32 }
 0x753   : > { %v2970_v38 = vrot.slane %v7214_v33, %v2969_v34  ;;  %v2978_v39 = vrot.slane %v7214_v33, %v2977_v35 }
 0x754   : > { %3615 = vmatpush1.bf16.msra.mxu0 %v5625_v41  ;;  %3656 = vmatpush1.bf16.msra.mxu1 %v5627_v42 }
 0x755   : > { %3616 = vmatprep.subr.bf16.mxu0 %v5642_v43  ;;  %3657 = vmatprep.subr.bf16.mxu1 %v5644_v44 }
 0x758   : > { %3617 = vmatpush1.bf16.msra.mxu0 %v5641_v49  ;;  %3658 = vmatpush1.bf16.msra.mxu1 %v5643_v50 }
 0x759   : > { %3618 = vmatprep.subr.bf16.mxu0 %v5658_v51  ;;  %3659 = vmatprep.subr.bf16.mxu1 %v5660_v52 }
 0x75c   : > { %3619 = vmatpush1.bf16.msra.mxu0 %v5657_v53  ;;  %3660 = vmatpush1.bf16.msra.mxu1 %v5659_v54 }
 0x75d   : > { %5900 = vmatprep.subr.bf16.mxu0 %v6425_v15  ;;  %5922 = vmatprep.subr.bf16.mxu1 %v6426_v55 }
 0x75f   : > { %5667 = vmatmul.mubr.msk.bf16.vlgmr.msra.gmra.mrb[52].mxu0 %vm1126_vm4, %v7102_v31  ;;  %5668 = vmatmul.mubr.msk.bf16.vlgmr.msra.gmra.mrb[52].mxu1 %vm1126_vm4, %v7102_v31  ;;  %v6437_v31 = vld [vmem:[%s6799_s7 + $0x58] sm:$0xff]  }
 0x760   : > { %5901 = vmatpush3.bf16.msra.mxu0 %v6427_v56  ;;  %5923 = vmatpush3.bf16.msra.mxu1 %v6428_v57  ;;  %v6459_v57 = vld [vmem:[%s6799_s7 + $0x100] sm:$0xff]  }
 0x761   : > { %5902 = vmatprep.subr.bf16.mxu0 %v6429_v58  ;;  %5924 = vmatprep.subr.bf16.mxu1 %v6430_v59  ;;  %v6460_v58 = vld [vmem:[%s6799_s7 + $0x180] sm:$0xff]  }
 0x764   : > { %5903 = vmatpush3.bf16.msra.mxu0 %v6431_v60  ;;  %5925 = vmatpush3.bf16.msra.mxu1 %v6432_v61  ;;  %v6461_v61 = vld [vmem:[%s6799_s7 + $0x148] sm:$0xff]  }
 0x765   : > { %5904 = vmatprep.subr.bf16.mxu0 %v6433_v62  ;;  %5926 = vmatprep.subr.bf16.mxu1 %v6434_v63  ;;  %v6462_v62 = vld [vmem:[%s6799_s7 + $0x1c8] sm:$0xff]  }
 0x766   : > { %v6463_v63 = vld [vmem:[%s6799_s7 + $0x108] sm:$0xff]  }
 0x768   : > { %5905 = vmatpush3.bf16.msra.mxu0 %v6435_v0  ;;  %5927 = vmatpush3.bf16.msra.mxu1 %v6436_v1  ;;  %v6464_v0 = vld [vmem:[%s6799_s7 + $0x188] sm:$0xff]   ;;  %v2985_v1 = vsub.s32 5, %v7200_v25 }
 0x769   : > { %5906 = vmatprep.subr.bf16.mxu0 %v6437_v31  ;;  %5928 = vmatprep.subr.bf16.mxu1 %v6438_v2  ;;  %v2993_v31 = vsub.s32 7, %v7200_v25  ;;  %v6465_v2 = vld [vmem:[%s6799_s7 + $0x150] sm:$0xff]  }
 0x76c   : > { %5907 = vmatpush3.bf16.msra.mxu0 %v6439_v3  ;;  %5929 = vmatpush3.bf16.msra.mxu1 %v6440_v4  ;;  %v6466_v3 = vld [vmem:[%s6799_s7 + $0x1d0] sm:$0xff]   ;;  %v2986_v4 = vrot.slane %v7214_v33, %v2985_v1 }
 0x76d   : > { %5908 = vmatprep.subr.bf16.mxu0 %v6441_v5  ;;  %5930 = vmatprep.subr.bf16.mxu1 %v6442_v6  ;;  %v2994_v5 = vrot.slane %v7214_v33, %v2993_v31  ;;  %v6467_v6 = vld [vmem:[%s6799_s7 + $0x110] sm:$0xff]  }
 0x770   : > { %5909 = vmatpush3.bf16.msra.mxu0 %v6443_v7  ;;  %5931 = vmatpush3.bf16.msra.mxu1 %v6444_v8  ;;  %v6468_v7 = vld [vmem:[%s6799_s7 + $0x190] sm:$0xff]   ;;  %v6469_v8 = vld [vmem:[%s6799_s7 + $0x158] sm:$0xff]  }
 0x771   : > { %5910 = vmatprep.subr.bf16.mxu0 %v6445_v9  ;;  %5932 = vmatprep.subr.bf16.mxu1 %v6446_v10  ;;  %v6470_v9 = vld [vmem:[%s6799_s7 + $0x1d8] sm:$0xff]  }
 0x774   : > { %5911 = vmatpush3.bf16.msra.mxu0 %v6447_v11  ;;  %5933 = vmatpush3.bf16.msra.mxu1 %v6448_v13 }
 0x775   : > { %5912 = vmatprep.subr.bf16.mxu0 %v6449_v14  ;;  %5934 = vmatprep.subr.bf16.mxu1 %v6450_v12 }
 0x778   : > { %5913 = vmatpush3.bf16.msra.mxu0 %v6451_v16  ;;  %5935 = vmatpush3.bf16.msra.mxu1 %v6452_v17 }
 0x779   : > { %5914 = vmatprep.subr.bf16.mxu0 %v6453_v18  ;;  %5936 = vmatprep.subr.bf16.mxu1 %v6454_v19  ;;  %v6471_v19 = vld [vmem:[%s6799_s7 + $0x118] sm:$0xff]  }
 0x77c   : > { %5915 = vmatpush3.bf16.msra.mxu0 %v6455_v20  ;;  %5937 = vmatpush3.bf16.msra.mxu1 %v6456_v21  ;;  %v6472_v20 = vld [vmem:[%s6799_s7 + $0x198] sm:$0xff]  }
 0x77d   : > { %5944 = vmatprep.subr.bf16.mxu0 %v6457_v22  ;;  %5966 = vmatprep.subr.bf16.mxu1 %v6458_v23  ;;  %v6473_v23 = vld [vmem:[%s6799_s7 + $0x160] sm:$0xff]  }
 0x802   : > { %v3400_v40 = vpop.f32.mrb[40].mxu0  ;;  %v3441_v41 = vpop.f32.mrb[40].mxu1 }
 0x803   : > { %v3401_v42 = vadd.f32 %v3400_v40, %v2966_v36  ;;  %v3442_v43 = vadd.f32 %v3441_v41, %v2974_v37  ;;  %v3402_v44 = vpop.f32.mrb[41].mxu0  ;;  %v3443_v45 = vpop.f32.mrb[41].mxu1  ;;  %v6475_v40 = vld [vmem:[%s6799_s7 + $0x120] sm:$0xff]  }
 0x804   : > { %v3403_v46 = vadd.f32 %v3402_v44, %v2970_v38  ;;  %v3444_v47 = vadd.f32 %v3443_v45, %v2978_v39  ;;  %v3404_v48 = vpop.f32.mrb[42].mxu0  ;;  %v3445_v49 = vpop.f32.mrb[42].mxu1  ;;  %v6476_v41 = vld [vmem:[%s6799_s7 + $0x1a0] sm:$0xff]   ;;  %v6478_v44 = vld [vmem:[%s6799_s7 + $0x1e8] sm:$0xff]  }
 0x805   : > { %v3694_v50 = vmax.f32 %v3401_v42, 0.0  ;;  %v3696_v51 = vmax.f32 %v3442_v43, 0.0  ;;  %v3405_v52 = vpop.f32.mrb[43].mxu0  ;;  %v3446_v53 = vpop.f32.mrb[43].mxu1  ;;  %v2981_v42 = vsub.s32 4, %v7200_v25  ;;  %v6477_v43 = vld [vmem:[%s6799_s7 + $0x168] sm:$0xff]   ;;  %v2990_v48 = vrot.slane %v7214_v33, %v2989_v26 }
 0x806   : > { %v3695_v54 = vmax.f32 %v3403_v46, 0.0  ;;  %v3697_v15 = vmax.f32 %v3444_v47, 0.0  ;;  %v6479_v45 = vld [vmem:[%s6799_s7 + $0x128] sm:$0xff]   ;;  %v6481_v49 = vld [vmem:[%s6799_s7 + $0x170] sm:$0xff]   ;;  %v3006_v52 = vrot.slane %v7204_v27, %v2973_v32  ;;  %v3002_v26 = vrot.slane %v7204_v27, %v2969_v34  ;;  %v6486_v32 = vld [vmem:[%s6799_s7 + $0x1f8] sm:$0xff]  }
 0x807   : > { %v3710_v59 = vpack.c.bf16 %v3694_v50, %v3694_v50  ;;  %v3712_v60 = vpack.c.bf16 %v3696_v51, %v3696_v51  ;;  %v6480_v46 = vld [vmem:[%s6799_s7 + $0x1a8] sm:$0xff]   ;;  %v2982_v47 = vrot.slane %v7214_v33, %v2981_v42  ;;  %v6482_v50 = vld [vmem:[%s6799_s7 + $0x1f0] sm:$0xff]   ;;  %v2998_v51 = vrot.slane %v7204_v27, %v2965_v29  ;;  %v6485_v29 = vld [vmem:[%s6799_s7 + $0x178] sm:$0xff]  }
 0x808   : > { %v3711_v55 = vpack.c.bf16 %v3695_v54, %v3695_v54  ;;  %v3713_v56 = vpack.c.bf16 %v3697_v15, %v3697_v15  ;;  %v3010_v33 = vrot.slane %v7204_v27, %v2977_v35  ;;  %v6483_v53 = vld [vmem:[%s6799_s7 + $0x130] sm:$0xff]  }
 0x809   : > { %v6484_v54 = vld [vmem:[%s6799_s7 + $0x1b0] sm:$0xff]  }
 0x80a   : > { %4789 = vmatprep.mubr.bf16.mxu0 %v3711_v55  ;;  %4829 = vmatprep.mubr.bf16.mxu1 %v3713_v56 }
 0x80b   : > { %4790 = vmatmul.mubr.bf16.vlgmr.msra.gmra.mrb[56].mxu0 %v3710_v59  ;;  %4830 = vmatmul.mubr.bf16.vlgmr.msra.gmra.mrb[56].mxu1 %v3712_v60 }
 0x80c   : > { %5945 = vmatpush3.bf16.msra.mxu0 %v6459_v57  ;;  %5967 = vmatpush3.bf16.msra.mxu1 %v6460_v58 }
 0x80d   : > { %5946 = vmatprep.subr.bf16.mxu0 %v6461_v61  ;;  %5968 = vmatprep.subr.bf16.mxu1 %v6462_v62 }
 0x810   : > { %5947 = vmatpush3.bf16.msra.mxu0 %v6463_v63  ;;  %5969 = vmatpush3.bf16.msra.mxu1 %v6464_v0  ;;  %v6487_v0 = vld [vmem:[%s6799_s7 + $0x138] sm:$0xff]  }
 0x811   : > { %5948 = vmatprep.subr.bf16.mxu0 %v6465_v2  ;;  %5970 = vmatprep.subr.bf16.mxu1 %v6466_v3  ;;  %v6488_v2 = vld [vmem:[%s6799_s7 + $0x1b8] sm:$0xff]  }
 0x812   : > { %v3482_v10 = vpop.f32.mrb[44].mxu0  ;;  %v3523_v11 = vpop.f32.mrb[44].mxu1 }
 0x813   : > { %v3484_v13 = vpop.f32.mrb[45].mxu0  ;;  %v3525_v14 = vpop.f32.mrb[45].mxu1  ;;  %v3483_v15 = vadd.f32 %v3482_v10, %v2982_v47  ;;  %v3524_v55 = vadd.f32 %v3523_v11, %v2990_v48  ;;  %v6491_v11 = vld [vmem:[%s6799_s7 + $0x200] sm:$0xff]   ;;  %v6503_v48 = vld [vmem:[%s6799_s7 + $0x218] sm:$0xff]  }
 0x814   : > { %v3485_v12 = vadd.f32 %v3484_v13, %v2986_v4  ;;  %v3526_v16 = vadd.f32 %v3525_v14, %v2994_v5  ;;  %v3486_v17 = vpop.f32.mrb[46].mxu0  ;;  %v3527_v18 = vpop.f32.mrb[46].mxu1  ;;  %5949 = vmatpush3.bf16.msra.mxu0 %v6467_v6  ;;  %5971 = vmatpush3.bf16.msra.mxu1 %v6468_v7  ;;  %v6489_v7 = vld [vmem:[%s6799_s7 + $0x240] sm:$0xff]  }
 0x815   : > { %v3487_v21 = vpop.f32.mrb[47].mxu0  ;;  %v3528_v22 = vpop.f32.mrb[47].mxu1  ;;  %5950 = vmatprep.subr.bf16.mxu0 %v6469_v8  ;;  %5972 = vmatprep.subr.bf16.mxu1 %v6470_v9  ;;  %v3698_v3 = vmax.f32 %v3483_v15, 0.0  ;;  %v3700_v4 = vmax.f32 %v3524_v55, 0.0  ;;  %v6490_v8 = vld [vmem:[%s6799_s7 + $0x2c0] sm:$0xff]   ;;  %v6493_v17 = vld [vmem:[%s6799_s7 + $0x248] sm:$0xff]  }
 0x816   : > { %v3699_v36 = vmax.f32 %v3485_v12, 0.0  ;;  %v3701_v37 = vmax.f32 %v3526_v16, 0.0  ;;  %v6492_v12 = vld [vmem:[%s6799_s7 + $0x280] sm:$0xff]   ;;  %v6494_v18 = vld [vmem:[%s6799_s7 + $0x2c8] sm:$0xff]   ;;  %v6497_v22 = vld [vmem:[%s6799_s7 + $0x250] sm:$0xff]  }
 0x817   : > { %v3714_v13 = vpack.c.bf16 %v3698_v3, %v3698_v3  ;;  %v3716_v14 = vpack.c.bf16 %v3700_v4, %v3700_v4  ;;  %v6496_v21 = vld [vmem:[%s6799_s7 + $0x288] sm:$0xff]  }
 0x818   : > { %v3715_v38 = vpack.c.bf16 %v3699_v36, %v3699_v36  ;;  %v3717_v39 = vpack.c.bf16 %v3701_v37, %v3701_v37  ;;  %5951 = vmatpush3.bf16.msra.mxu0 %v6471_v19  ;;  %5973 = vmatpush3.bf16.msra.mxu1 %v6472_v20  ;;  %v6495_v20 = vld [vmem:[%s6799_s7 + $0x208] sm:$0xff]   ;;  %v6499_v36 = vld [vmem:[%s6799_s7 + $0x210] sm:$0xff]  }
 0x819   : > { %5952 = vmatprep.subr.bf16.mxu0 %v6473_v23  ;;  %5974 = vmatprep.subr.bf16.mxu1 %v6474_v24  ;;  %v6498_v23 = vld [vmem:[%s6799_s7 + $0x2d0] sm:$0xff]   ;;  %v3014_v24 = vrot.slane %v7204_v27, %v2981_v42  ;;  %v6511_v15 = vld [vmem:[%s6799_s7 + $0x228] sm:$0xff]  }
 0x81a   : > { %4869 = vmatprep.mubr.bf16.mxu0 %v3715_v38  ;;  %4909 = vmatprep.mubr.bf16.mxu1 %v3717_v39  ;;  %v6500_v37 = vld [vmem:[%s6799_s7 + $0x290] sm:$0xff]   ;;  %v6501_v38 = vld [vmem:[%s6799_s7 + $0x258] sm:$0xff]   ;;  %v6512_v55 = vld [vmem:[%s6799_s7 + $0x2a8] sm:$0xff]  }
 0x81c   : > { %5953 = vmatpush3.bf16.msra.mxu0 %v6475_v40  ;;  %5975 = vmatpush3.bf16.msra.mxu1 %v6476_v41  ;;  %v6502_v41 = vld [vmem:[%s6799_s7 + $0x2d8] sm:$0xff]  }
 0x81d   : > { %5954 = vmatprep.subr.bf16.mxu0 %v6477_v43  ;;  %5976 = vmatprep.subr.bf16.mxu1 %v6478_v44 }
 0x820   : > { %5955 = vmatpush3.bf16.msra.mxu0 %v6479_v45  ;;  %5977 = vmatpush3.bf16.msra.mxu1 %v6480_v46 }
 0x821   : > { %5956 = vmatprep.subr.bf16.mxu0 %v6481_v49  ;;  %5978 = vmatprep.subr.bf16.mxu1 %v6482_v50 }
 0x822   : > { %v3564_v56 = vpop.f32.mrb[48].mxu0  ;;  %v3605_v57 = vpop.f32.mrb[48].mxu1 }
 0x823   : > { %v7285_v58 = vadd.f32 %v3564_v56, %v2998_v51  ;;  %v7287_v59 = vadd.f32 %v3605_v57, %v3006_v52  ;;  %v3566_v34 = vpop.f32.mrb[49].mxu0  ;;  %v3607_v60 = vpop.f32.mrb[49].mxu1  ;;  %v6504_v51 = vld [vmem:[%s6799_s7 + $0x298] sm:$0xff]   ;;  %v6505_v52 = vld [vmem:[%s6799_s7 + $0x260] sm:$0xff]   ;;  %v3018_v56 = vrot.slane %v7204_v27, %v2985_v1  ;;  %v3026_v57 = vrot.slane %v7204_v27, %v2993_v31 }
 0x824   : > { %v3567_v35 = vadd.f32 %v3566_v34, %v3002_v26  ;;  %v3608_v61 = vadd.f32 %v3607_v60, %v3010_v33  ;;  %v3568_v62 = vpop.f32.mrb[50].mxu0  ;;  %v3609_v63 = vpop.f32.mrb[50].mxu1  ;;  %5957 = vmatpush3.bf16.msra.mxu0 %v6483_v53  ;;  %5979 = vmatpush3.bf16.msra.mxu1 %v6484_v54  ;;  %v6507_v26 = vld [vmem:[%s6799_s7 + $0x220] sm:$0xff]   ;;  %v6509_v53 = vld [vmem:[%s6799_s7 + $0x268] sm:$0xff]   ;;  %v6515_v34 = vld [vmem:[%s6799_s7 + $0x230] sm:$0xff]  }
 0x825   : > { %v3569_v5 = vpop.f32.mrb[51].mxu0  ;;  %v3610_v6 = vpop.f32.mrb[51].mxu1  ;;  %5958 = vmatprep.subr.bf16.mxu0 %v6485_v29  ;;  %5980 = vmatprep.subr.bf16.mxu1 %v6486_v32  ;;  %v6508_v33 = vld [vmem:[%s6799_s7 + $0x2a0] sm:$0xff]   ;;  %v6510_v54 = vld [vmem:[%s6799_s7 + $0x2e8] sm:$0xff]   ;;  %v6513_v29 = vld [vmem:[%s6799_s7 + $0x270] sm:$0xff]   ;;  %v3702_v25 = vmax.f32 %v7285_v58, 0.0 }
 0x826   : > { %v3703_v9 = vmax.f32 %v3567_v35, 0.0  ;;  %v3705_v10 = vmax.f32 %v3608_v61, 0.0  ;;  %v6514_v32 = vld [vmem:[%s6799_s7 + $0x2f0] sm:$0xff]   ;;  %v6517_v35 = vld [vmem:[%s6799_s7 + $0x278] sm:$0xff]   ;;  %v6521_v31 = vld [vmem:[%s6799_s7 + $0x340] sm:$0xff]  }
 0x827   : > { %v6516_v60 = vld [vmem:[%s6799_s7 + $0x2b0] sm:$0xff]   ;;  %v6518_v61 = vld [vmem:[%s6799_s7 + $0x2f8] sm:$0xff]   ;;  %v6523_v5 = vld [vmem:[%s6799_s7 + $0x300] sm:$0xff]   ;;  %v3718_v6 = vpack.c.bf16 %v3702_v25, %v3702_v25 }
 0x828   : > { %5959 = vmatpush3.bf16.msra.mxu0 %v6487_v0  ;;  %5981 = vmatpush3.bf16.msra.mxu1 %v6488_v2  ;;  %v3719_v16 = vpack.c.bf16 %v3703_v9, %v3703_v9  ;;  %v3721_v19 = vpack.c.bf16 %v3705_v10, %v3705_v10  ;;  %v6519_v1 = vld [vmem:[%s6799_s7 + $0x238] sm:$0xff]   ;;  %v3704_v0 = vmax.f32 %v7287_v59, 0.0  ;;  %v6522_v2 = vld [vmem:[%s6799_s7 + $0x3c0] sm:$0xff]   ;;  %v6526_v59 = vld [vmem:[%s6799_s7 + $0x3c8] sm:$0xff]  }
 0x829   : > { %5988 = vmatprep.subr.bf16.mxu0 %v6489_v7  ;;  %6010 = vmatprep.subr.bf16.mxu1 %v6490_v8  ;;  %v6520_v27 = vld [vmem:[%s6799_s7 + $0x2b8] sm:$0xff]   ;;  %v6524_v58 = vld [vmem:[%s6799_s7 + $0x380] sm:$0xff]   ;;  %v6525_v8 = vld [vmem:[%s6799_s7 + $0x348] sm:$0xff]  }
 0x82a   : > { %v3720_v7 = vpack.c.bf16 %v3704_v0, %v3704_v0 }
 0x82b   : > { %4870 = vmatmul.mubr.bf16.vlgmr.msra.gmra.mrb[60].mxu0 %v3714_v13  ;;  %4910 = vmatmul.mubr.bf16.vlgmr.msra.gmra.mrb[60].mxu1 %v3716_v14  ;;  %v6528_v13 = vld [vmem:[%s6799_s7 + $0x388] sm:$0xff]   ;;  %v6529_v14 = vld [vmem:[%s6799_s7 + $0x350] sm:$0xff]  }
 0x82c   : > { %5989 = vmatpush3.bf16.msra.mxu0 %v6491_v11  ;;  %4949 = vmatprep.mubr.bf16.mxu0 %v3719_v16  ;;  %v6527_v11 = vld [vmem:[%s6799_s7 + $0x308] sm:$0xff]   ;;  %v6531_v16 = vld [vmem:[%s6799_s7 + $0x310] sm:$0xff]  }
 0x82d   : > { %6011 = vmatpush3.bf16.msra.mxu1 %v6492_v12  ;;  %4989 = vmatprep.mubr.bf16.mxu1 %v3721_v19  ;;  %v6530_v12 = vld [vmem:[%s6799_s7 + $0x3d0] sm:$0xff]   ;;  %v6534_v19 = vld [vmem:[%s6799_s7 + $0x3d8] sm:$0xff]  }
 0x82e   : > { %5990 = vmatprep.subr.bf16.mxu0 %v6493_v17  ;;  %6012 = vmatprep.subr.bf16.mxu1 %v6494_v18  ;;  %v6532_v17 = vld [vmem:[%s6799_s7 + $0x390] sm:$0xff]   ;;  %v6533_v18 = vld [vmem:[%s6799_s7 + $0x358] sm:$0xff]  }
 0x830   : > { %5991 = vmatpush3.bf16.msra.mxu0 %v6495_v20  ;;  %v6535_v20 = vld [vmem:[%s6799_s7 + $0x318] sm:$0xff]  }
 0x831   : > { %6013 = vmatpush3.bf16.msra.mxu1 %v6496_v21  ;;  %5992 = vmatprep.subr.bf16.mxu0 %v6497_v22  ;;  %v6536_v21 = vld [vmem:[%s6799_s7 + $0x398] sm:$0xff]   ;;  %v6537_v22 = vld [vmem:[%s6799_s7 + $0x360] sm:$0xff]  }
 0x832   : > { %v3646_v39 = vpop.f32.mrb[52].mxu0  ;;  %v3687_v40 = vpop.f32.mrb[52].mxu1  ;;  %6014 = vmatprep.subr.bf16.mxu1 %v6498_v23  ;;  %v6538_v23 = vld [vmem:[%s6799_s7 + $0x3e0] sm:$0xff]  }
 0x833   : > { %v7308_v43 = vadd.f32 %v3646_v39, %v3014_v24  ;;  %v7311_v44 = vadd.f32 %v3687_v40, %v7209_v28  ;;  %v3648_v42 = vpop.f32.mrb[53].mxu0  ;;  %v3689_v45 = vpop.f32.mrb[53].mxu1  ;;  %v6506_v28 = vld [vmem:[%s6799_s7 + $0x2e0] sm:$0xff]   ;;  %v6543_v39 = vld [vmem:[%s6799_s7 + $0x328] sm:$0xff]  }
 0x834   : > { %v3650_v46 = vpop.f32.mrb[54].mxu0  ;;  %v3691_v47 = vpop.f32.mrb[54].mxu1  ;;  %5993 = vmatpush3.bf16.msra.mxu0 %v6499_v36  ;;  %v3649_v62 = vadd.f32 %v3648_v42, %v3018_v56  ;;  %v3690_v63 = vadd.f32 %v3689_v45, %v3026_v57  ;;  %v6539_v24 = vld [vmem:[%s6799_s7 + $0x320] sm:$0xff]   ;;  %v6544_v40 = vld [vmem:[%s6799_s7 + $0x3a8] sm:$0xff]   ;;  %v6546_v42 = vld [vmem:[%s6799_s7 + $0x3f0] sm:$0xff]  }
 0x835   : > { %6015 = vmatpush3.bf16.msra.mxu1 %v6500_v37  ;;  %v3651_v49 = vpop.f32.mrb[55].mxu0  ;;  %v3692_v50 = vpop.f32.mrb[55].mxu1  ;;  %5994 = vmatprep.subr.bf16.mxu0 %v6501_v38  ;;  %v6540_v36 = vld [vmem:[%s6799_s7 + $0x3a0] sm:$0xff]   ;;  %v6541_v37 = vld [vmem:[%s6799_s7 + $0x368] sm:$0xff]   ;;  %v6547_v45 = vld [vmem:[%s6799_s7 + $0x330] sm:$0xff]  }
 0x836   : > { %6016 = vmatprep.subr.bf16.mxu1 %v6502_v41  ;;  %v3707_v3 = vmax.f32 %v3649_v62, 0.0  ;;  %v3709_v4 = vmax.f32 %v3690_v63, 0.0  ;;  %v6542_v38 = vld [vmem:[%s6799_s7 + $0x3e8] sm:$0xff]   ;;  %v6545_v41 = vld [vmem:[%s6799_s7 + $0x370] sm:$0xff]   ;;  %v6549_v47 = vld [vmem:[%s6799_s7 + $0x378] sm:$0xff]   ;;  %v3706_v50 = vmax.f32 %v7308_v43, 0.0 }
 0x837   : > { %v6548_v46 = vld [vmem:[%s6799_s7 + $0x3b0] sm:$0xff]   ;;  %v6551_v49 = vld [vmem:[%s6799_s7 + $0x338] sm:$0xff]  }
 0x838   : > { %5995 = vmatpush3.bf16.msra.mxu0 %v6503_v48  ;;  %v3723_v9 = vpack.c.bf16 %v3707_v3, %v3707_v3  ;;  %v3725_v10 = vpack.c.bf16 %v3709_v4, %v3709_v4  ;;  %v6550_v48 = vld [vmem:[%s6799_s7 + $0x3f8] sm:$0xff]  }
 0x839   : > { %6017 = vmatpush3.bf16.msra.mxu1 %v6504_v51  ;;  %5996 = vmatprep.subr.bf16.mxu0 %v6505_v52  ;;  %v6552_v51 = vld [vmem:[%s6799_s7 + $0x3b8] sm:$0xff]   ;;  %v3708_v52 = vmax.f32 %v7311_v44, 0.0  ;;  %s7514_s7 = sld [smem:[#allocation21_spill]] (!%p5800_p5) }
 0x83a   : > { %6018 = vmatprep.subr.bf16.mxu1 %v6506_v28  ;;  %v3722_v28 = vpack.c.bf16 %v3706_v50, %v3706_v50 }
 0x83c   : > { %5997 = vmatpush3.bf16.msra.mxu0 %v6507_v26  ;;  %v3724_v26 = vpack.c.bf16 %v3708_v52, %v3708_v52 }
 0x83d   : > { %6019 = vmatpush3.bf16.msra.mxu1 %v6508_v33  ;;  %5998 = vmatprep.subr.bf16.mxu0 %v6509_v53 }
 0x83e   : > { %6020 = vmatprep.subr.bf16.mxu1 %v6510_v54  ;;  %v5669_v54 = vld [vmem:[%s947_s4] ss:$0 sm:$0xff] }
 0x840   : > { %5999 = vmatpush3.bf16.msra.mxu0 %v6511_v15 }
 0x841   : > { %6021 = vmatpush3.bf16.msra.mxu1 %v6512_v55  ;;  %6000 = vmatprep.subr.bf16.mxu0 %v6513_v29 }
 0x842   : > { %6022 = vmatprep.subr.bf16.mxu1 %v6514_v32 }
 0x844   : > { %6001 = vmatpush3.bf16.msra.mxu0 %v6515_v34 }
 0x845   : > { %6023 = vmatpush3.bf16.msra.mxu1 %v6516_v60  ;;  %6002 = vmatprep.subr.bf16.mxu0 %v6517_v35 }
 0x846   : > { %6024 = vmatprep.subr.bf16.mxu1 %v6518_v61 }
 0x848   : > { %6003 = vmatpush3.bf16.msra.mxu0 %v6519_v1 }
 0x849   : > { %6025 = vmatpush3.bf16.msra.mxu1 %v6520_v27  ;;  %6032 = vmatprep.subr.bf16.mxu0 %v6521_v31 }
 0x84a   : > { %6054 = vmatprep.subr.bf16.mxu1 %v6522_v2 }
 0x84b   : > { %4950 = vmatmul.mubr.bf16.vlgmr.msra.gmra.mrb[64].mxu0 %v3718_v6 }
 0x84c   : > { %4990 = vmatmul.mubr.bf16.vlgmr.msra.gmra.mrb[64].mxu1 %v3720_v7  ;;  %6033 = vmatpush3.bf16.msra.mxu0 %v6523_v5 }
 0x84d   : > { %5029 = vmatprep.mubr.bf16.mxu0 %v3723_v9  ;;  %6055 = vmatpush3.bf16.msra.mxu1 %v6524_v58 }
 0x84e   : > { %5069 = vmatprep.mubr.bf16.mxu1 %v3725_v10  ;;  %6034 = vmatprep.subr.bf16.mxu0 %v6525_v8 }
 0x84f   : > { %6056 = vmatprep.subr.bf16.mxu1 %v6526_v59 }
 0x850   : > { %6035 = vmatpush3.bf16.msra.mxu0 %v6527_v11 }
 0x851   : > { %6057 = vmatpush3.bf16.msra.mxu1 %v6528_v13  ;;  %6036 = vmatprep.subr.bf16.mxu0 %v6529_v14 }
 0x852   : > { %6058 = vmatprep.subr.bf16.mxu1 %v6530_v12 }
 0x854   : > { %6037 = vmatpush3.bf16.msra.mxu0 %v6531_v16 }
 0x855   : > { %6059 = vmatpush3.bf16.msra.mxu1 %v6532_v17  ;;  %6038 = vmatprep.subr.bf16.mxu0 %v6533_v18 }
 0x856   : > { %6060 = vmatprep.subr.bf16.mxu1 %v6534_v19 }
 0x858   : > { %6039 = vmatpush3.bf16.msra.mxu0 %v6535_v20 }
 0x859   : > { %6061 = vmatpush3.bf16.msra.mxu1 %v6536_v21  ;;  %6040 = vmatprep.subr.bf16.mxu0 %v6537_v22 }
 0x85a   : > { %6062 = vmatprep.subr.bf16.mxu1 %v6538_v23 }
 0x85c   : > { %6041 = vmatpush3.bf16.msra.mxu0 %v6539_v24 }
 0x85d   : > { %6063 = vmatpush3.bf16.msra.mxu1 %v6540_v36  ;;  %6042 = vmatprep.subr.bf16.mxu0 %v6541_v37 }
 0x85e   : > { %6064 = vmatprep.subr.bf16.mxu1 %v6542_v38 }
 0x860   : > { %6043 = vmatpush3.bf16.msra.mxu0 %v6543_v39 }
 0x861   : > { %6065 = vmatpush3.bf16.msra.mxu1 %v6544_v40  ;;  %6044 = vmatprep.subr.bf16.mxu0 %v6545_v41 }
 0x862   : > { %6066 = vmatprep.subr.bf16.mxu1 %v6546_v42 }
 0x864   : > { %6045 = vmatpush3.bf16.msra.mxu0 %v6547_v45 }
 0x865   : > { %6067 = vmatpush3.bf16.msra.mxu1 %v6548_v46  ;;  %6046 = vmatprep.subr.bf16.mxu0 %v6549_v47 }
 0x866   : > { %6068 = vmatprep.subr.bf16.mxu1 %v6550_v48 }
 0x868   : > { %6047 = vmatpush3.bf16.msra.mxu0 %v6551_v49 }
 0x869   : > { %6069 = vmatpush3.bf16.msra.mxu1 %v6552_v51 }
 0x86b   : > { %5030 = vmatmul.mubr.bf16.vlgmr.msra.gmra.mrb[68].mxu0 %v3722_v28  ;;  %v5799_v28 = vld [vmem:[%s7509_s29] ss:$0 sm:$0xff] }
 0x86c   : > { %5070 = vmatmul.mubr.bf16.vlgmr.msra.gmra.mrb[68].mxu1 %v3724_v26 }
 0x8de   : > { %v5916_v33 = vpop.f32.mrb[56].mxu0  ;;  %v5938_v53 = vpop.f32.mrb[56].mxu1 }
 0x8df   : > { %v5917_v43 = vpop.f32.mrb[57].mxu0  ;;  %v5939_v15 = vpop.f32.mrb[57].mxu1 }
 0x8e0   : > { %v5918_v55 = vadd.f32 %v5917_v43, %v5916_v33  ;;  %v5940_v29 = vadd.f32 %v5939_v15, %v5938_v53  ;;  %v5919_v32 = vpop.f32.mrb[58].mxu0  ;;  %v5941_v44 = vpop.f32.mrb[58].mxu1  ;;  %v5113_v53 = vld [vmem:[%s7510_s21] sm:$0xff] (!%p5800_p5)  ;;  %v5115_v43 = vld [vmem:[%s7510_s21 + $0x10] sm:$0xff] (!%p5800_p5)  ;;  %v6588_v15 = vmov (!%p5800_p5), 0.0|0.0  }
 0x8e1   : > { %v5920_v56 = vpop.f32.mrb[59].mxu0  ;;  %v5942_v57 = vpop.f32.mrb[59].mxu1  ;;  %6338 = vmatprep.subr.bf16.mxu0 (!%p5800_p5), %v6588_v15  ;;  %v6590_v32 = vmov (!%p5800_p5), 0.0   ;;  %6350 = vmatprep.subr.bf16.mxu1 (!%p5800_p5), %v6588_v15 }
 0x8e2   : > { %v4792_v34 = vadd.f32 %v5918_v55, %v5669_v54  ;;  %v5114_v54 = vld [vmem:[%s7510_s21 + $0x8] sm:$0xff] (!%p5800_p5)  ;;  %6321 = vmatprep.mubr.msk.f32.mxu0 (!%p5800_p5), %vm6589_vm7, %v6590_v32  ;;  %6332 = vmatprep.mubr.msk.f32.mxu1 (!%p5800_p5), %vm6589_vm7, %v6590_v32  ;;  %v5202_v56 = vld [vmem:[%s7511_s28] sm:$0xff] (!%p5800_p5) }
 0x8e3   : > { %v6339_v55 = vpack.c.bf16 (!%p5800_p5), %v5114_v54, %v5113_v53  ;;  %v5203_v57 = vld [vmem:[%s7511_s28 + $0x8] sm:$0xff] (!%p5800_p5) }
 0x8e4   : > { %v4832_v60 = vadd.f32 %v5940_v29, %v4792_v34  ;;  %v5116_v29 = vld [vmem:[%s7510_s21 + $0x18] sm:$0xff] (!%p5800_p5)  ;;  %v5117_v34 = vld [vmem:[%s7510_s21 + $0x20] sm:$0xff] (!%p5800_p5) }
 0x8e5   : > { %6340 = vmatpush3.bf16.msra.mxu0 (!%p5800_p5), %v6339_v55  ;;  %v6342_v44 = vpack.c.bf16 (!%p5800_p5), %v5116_v29, %v5115_v43 }
 0x8e6   : > { %6341 = vmatprep.subr.bf16.mxu0 (!%p5800_p5), %v6588_v15 }
 0x8e9   : > { %6343 = vmatpush3.bf16.msra.mxu0 (!%p5800_p5), %v6342_v44 }
 0x8ea   : > { %6344 = vmatprep.subr.bf16.mxu0 (!%p5800_p5), %v6588_v15 }
 0x8fe   : > { %v5960_v35 = vpop.f32.mrb[60].mxu0  ;;  %v5982_v61 = vpop.f32.mrb[60].mxu1 }
 0x8ff   : > { %v5961_v62 = vpop.f32.mrb[61].mxu0  ;;  %v5983_v63 = vpop.f32.mrb[61].mxu1 }
 0x900   : > { %v5962_v1 = vadd.f32 %v5961_v62, %v5960_v35  ;;  %v5984_v25 = vadd.f32 %v5983_v63, %v5982_v61  ;;  %v5963_v27 = vpop.f32.mrb[62].mxu0  ;;  %v5985_v31 = vpop.f32.mrb[62].mxu1  ;;  %v6351_v35 = vpack.c.bf16 (!%p5800_p5), %v5203_v57, %v5202_v56  ;;  %v5119_v62 = vld [vmem:[%s7510_s21 + $0x30] sm:$0xff] (!%p5800_p5)  ;;  %v5120_v63 = vld [vmem:[%s7510_s21 + $0x38] sm:$0xff] (!%p5800_p5) }
 0x901   : > { %v5964_v0 = vpop.f32.mrb[63].mxu0  ;;  %v5986_v2 = vpop.f32.mrb[63].mxu1  ;;  %v5204_v27 = vld [vmem:[%s7511_s28 + $0x10] sm:$0xff] (!%p5800_p5)  ;;  %v5205_v31 = vld [vmem:[%s7511_s28 + $0x18] sm:$0xff] (!%p5800_p5) }
 0x902   : > { %v4872_v3 = vadd.f32 %v5962_v1, %v4832_v60  ;;  %v5118_v60 = vld [vmem:[%s7510_s21 + $0x28] sm:$0xff] (!%p5800_p5)  ;;  %6352 = vmatpush3.bf16.msra.mxu1 (!%p5800_p5), %v6351_v35  ;;  %v6348_v1 = vpack.c.bf16 (!%p5800_p5), %v5120_v63, %v5119_v62  ;;  %v6354_v0 = vpack.c.bf16 (!%p5800_p5), %v5205_v31, %v5204_v27  ;;  %v5801_v2 = vld [vmem:[%s7512_s30] ss:$0 sm:$0xff] (!%p5800_p5) }
 0x903   : > { %v6345_v61 = vpack.c.bf16 (!%p5800_p5), %v5118_v60, %v5117_v34  ;;  %6353 = vmatprep.subr.bf16.mxu1 (!%p5800_p5), %v6588_v15 }
 0x904   : > { %v4912_v4 = vadd.f32 %v5984_v25, %v4872_v3 }
 0x905   : > { %6346 = vmatpush3.bf16.msra.mxu0 (!%p5800_p5), %v6345_v61 }
 0x906   : > { %6347 = vmatprep.subr.bf16.mxu0 (!%p5800_p5), %v6588_v15  ;;  %6355 = vmatpush3.bf16.msra.mxu1 (!%p5800_p5), %v6354_v0 }
 0x909   : > { %6349 = vmatpush3.bf16.msra.mxu0 (!%p5800_p5), %v6348_v1 }
 0x91e   : > { %v6004_v5 = vpop.f32.mrb[64].mxu0 }
 0x91f   : > { %v6026_v6 = vpop.f32.mrb[64].mxu1  ;;  %v6005_v58 = vpop.f32.mrb[65].mxu0 }
 0x920   : > { %v6006_v7 = vadd.f32 %v6005_v58, %v6004_v5  ;;  %v6027_v8 = vpop.f32.mrb[65].mxu1  ;;  %v6007_v9 = vpop.f32.mrb[66].mxu0  ;;  %v5803_v58 = vld [vmem:[%s7513_s20] ss:$0 sm:$0xff] (!%p5800_p5) }
 0x921   : > { %v6028_v59 = vadd.f32 %v6027_v8, %v6026_v6  ;;  %v6029_v10 = vpop.f32.mrb[66].mxu1  ;;  %v6008_v11 = vpop.f32.mrb[67].mxu0 }
 0x922   : > { %v4952_v13 = vadd.f32 %v6006_v7, %v4912_v4  ;;  %v6030_v14 = vpop.f32.mrb[67].mxu1 }
 0x924   : > { %v4992_v12 = vadd.f32 %v6028_v59, %v4952_v13 }
 0x93e   : > { %v6048_v16 = vpop.f32.mrb[68].mxu0 }
 0x93f   : > { %v6070_v17 = vpop.f32.mrb[68].mxu1  ;;  %v6049_v18 = vpop.f32.mrb[69].mxu0 }
 0x940   : > { %v6050_v19 = vadd.f32 %v6049_v18, %v6048_v16  ;;  %v6071_v20 = vpop.f32.mrb[69].mxu1  ;;  %v6051_v21 = vpop.f32.mrb[70].mxu0 }
 0x941   : > { %v6072_v22 = vadd.f32 %v6071_v20, %v6070_v17  ;;  %v6073_v23 = vpop.f32.mrb[70].mxu1  ;;  %v6052_v24 = vpop.f32.mrb[71].mxu0 }
 0x942   : > { %v5032_v36 = vadd.f32 %v6050_v19, %v4992_v12  ;;  %v6074_v37 = vpop.f32.mrb[71].mxu1 }
 0x944   : > { %v5072_v38 = vadd.f32 %v6072_v22, %v5032_v36 }
 0x946   : > { %v5077_v39 = vadd.f32 %v5072_v38, %v7098_v30  ;;  %v5798_v30 = vld [vmem:[%s927_s8] ss:$0 sm:$0xff] }
 0x948   : > { %v5080_v40 = vsel %vm1126_vm4, %v5077_v39, 0.0 }
 0x949   : > { %5081 = vadd.xlane.f32.xlu0 %v5080_v40 }
 0x9d6   : > { %v5082_v41 = vpop.xlane.xlu0 %5081 }
 0x9d7   : > { %v5083_v42 = vmul.f32 0.015625, %v5082_v41 }
 0x9d9   : > { %v5084_v45 = vsub.f32 %v5077_v39, %v5083_v42 }
 0x9db   : > { %v5085_v46 = vmul.f32 %v5084_v45, %v5084_v45 }
 0x9dd   : > { %v5086_v47 = vsel %vm1126_vm4, %v5085_v46, 0.0 }
 0x9de   : > { %5087 = vadd.xlane.f32.xlu1 %v5086_v47 }
 0xa6b   : > { %v5088_v48 = vpop.xlane.xlu1 %5087 }
 0xa6c   : > { %v5089_v49 = vmul.f32 0.015625, %v5088_v48 }
 0xa6e   : > { %v5090_v50 = vadd.f32 1e-05, %v5089_v49 }
 0xa70   : > { %6571 = vrsqrt.f32 %v5090_v50 }
 0xa7a   : > { %v6572_v51 = vpop.eup %6571 }
 0xa7b   : > { %v5092_v52 = vmul.f32 %v6572_v51, %v5084_v45  ;;  %5111 = sbr.rel (%p5800_p5) target bundleno = 3128 (0xc38), region = 120 }
 0xa7d   : > { %v5099_v26 = vmul.f32 %v5798_v30, %v5092_v52 }
 0xa7f   : > { %v5106_v33 = vadd.f32 %v5799_v28, %v5099_v26 }
 0xa81   : > { %5107 = vst.msk [vmem:[#allocation2] sm:$0xff] %vm1126_vm4, %v5106_v33 }
 0xa88   : > { %v5112_v25 = vld [vmem:[#allocation2] sm:$0xff] }
 0xa89   : > { %6322 = vmatmul.mubr.msk.f32.vlgmr.msra.gmra.mrb[0].mxu0 %vm1126_vm4, %v5112_v25 }
 0xb5c   : > { %v5197_v3 = vpop.f32.mrb[0].mxu0 }
 0xb5d   : > { %v5198_v4 = vadd.f32 %v5801_v2, %v5197_v3  ;;  %v6323_v5 = vpop.f32.mrb[1].mxu0 }
 0xb5f   : > { %v5201_v6 = vmax.f32 %v5198_v4, 0.0 }
 0xb61   : > { %6333 = vmatmul.mubr.msk.f32.vlgmr.msra.gmra.mrb[0].mxu1 %vm5213_vm8, %v5201_v6 }
 0xc34   : > { %v5283_v7 = vpop.f32.mrb[0].mxu1 }
 0xc35   : > { %v5284_v8 = vadd.f32 %v5803_v58, %v5283_v7  ;;  %v6334_v9 = vpop.f32.mrb[1].mxu1 }
 0xc37   : > { %5288 = vst.msk [vmem:[%s7514_s7] sm:$0xff] %vm5287_vm9, %v5284_v8 }
 0xc38 PF: > { %s7515_s25 = sld [smem:[#allocation3_spill]] }
 0xc3e   : > { %s33_s4 = sadd.s32 1, %s7515_s25  }
 0xc3f   : > { %p30_p6 = scmp.ge.s32.totalorder %s33_s4, 4  }
 0xc41   :  { %32 = sbr.rel (!%p30_p6) target bundleno = 15 (0xf), region = 191 }

</bundles_post_ra>
